<compile_context>
chip_gen: v7x
topology: tpu7x:2x2x1
jax: 0.10.0
libtpu: 0.0.40
codegen_flags: <defaults>
</compile_context>

<pallas_src>
import math

import jax
import jax.numpy as jnp
from jax.experimental import pallas as pl
from jax.experimental.pallas import tpu as pltpu

_MIN_PALLAS_BYTES = 512 * 1024  # below this, pallas_call launch cost dominates
_MAX_TILE = 1024                # multiple of 128 -> tiled blocks always layout-legal
_MIN_GRID_STEPS = 4             # keep >= 2x TensorCore count (v7x has 2 TCs/chip)


def _vmem_capacity_bytes() -> int:
    """Physical per-core VMEM (v5e/v6e: 128 MiB, v7x: 64 MiB); conservative fallback."""
    try:
        cap = getattr(pltpu.get_tpu_info(), "vmem_capacity_bytes", None)
        if cap:
            return int(cap)
    except Exception:
        pass
    return 64 << 20


def _transpose_kernel(x_ref, o_ref):
    # x_ref: (BT, TM, TN) -> o_ref: (BT, TN, TM).  The swap runs on the XLU and
    # is fully hidden under the HBM DMA on every generation; do NOT route it
    # through the MXU or add deeper buffering.
    o_ref[...] = jnp.swapaxes(x_ref[...], 1, 2)


def _transpose_last_two(x3: jax.Array) -> jax.Array:
    """(B, M, N) -> (B, N, M) via a tiled, batch-folded Pallas transpose."""
    B, M, N = x3.shape
    itemsize = jnp.dtype(x3.dtype).itemsize

    # --- VMEM budgeting (generation aware) --------------------------------
    vmem_cap = _vmem_capacity_bytes()
    live_budget = min(vmem_cap // 4, 24 << 20)          # all live pipeline buffers
    per_block_budget = max(live_budget // 4, 1 << 20)   # double-buffered in + out
    vmem_limit = int(min(vmem_cap // 2, 64 << 20))

    # --- Tile selection ----------------------------------------------------
    # Each of tm / tn must be either the full dim or a multiple of 128 so that
    # BOTH the (BT, tm, tn) input block and the (BT, tn, tm) output block are
    # layout-legal.  Whole-dim blocks keep odd dims (M=197) unmasked.
    cap = _MAX_TILE
    while True:
        tm = M if M <= cap else cap
        tn = N if N <= cap else cap
        if tm * tn * itemsize <= per_block_budget or cap <= 128:
            break
        cap //= 2
    # TODO(synk): for large M that is not 128-aligned, tail tiles produce masked
    # stores; pad the output M axis in the wrapper if profiling shows store stalls.

    num_mt = pl.cdiv(M, tm)
    num_nt = pl.cdiv(N, tn)
    tiles_per_batch = num_mt * num_nt

    # --- Batch folding: several batch elements per block -------------------
    block_bytes = tm * tn * itemsize
    bt_budget = max(1, per_block_budget // block_bytes)
    # Don't collapse the grid below ~2x TC count (v7x megacore sharding).
    bt_grid = max(1, B // max(1, pl.cdiv(_MIN_GRID_STEPS, tiles_per_batch)))
    bt = int(min(B, bt_budget, bt_grid))

    # M-tile axis innermost: consecutive grid steps write adjacent output tiles
    # along the output's last (M) dim -> sequential HBM writeback.
    grid = (pl.cdiv(B, bt), num_nt, num_mt)
    return pl.pallas_call(
        _transpose_kernel,
        out_shape=jax.ShapeDtypeStruct((B, N, M), x3.dtype),
        grid=grid,
        in_specs=[pl.BlockSpec((bt, tm, tn), lambda b, j, i: (b, i, j))],
        out_specs=pl.BlockSpec((bt, tn, tm), lambda b, j, i: (b, j, i)),
        compiler_params=pltpu.CompilerParams(
            dimension_semantics=("parallel", "parallel", "parallel"),
            vmem_limit_bytes=vmem_limit,
        ),
    )(x3)


def transpose(x: jax.Array, dim0: int, dim1: int) -> jax.Array:
    """Pallas implementation of Transpose.forward: x.transpose(dim0, dim1)."""
    nd = x.ndim
    d0 = dim0 % nd
    d1 = dim1 % nd
    if d0 == d1:
        return x
    lo, hi = (d0, d1) if d0 < d1 else (d1, d0)
    if (lo, hi) != (nd - 2, nd - 1):
        # TODO(synk): dim pairs other than the trailing two have no clean blocked
        # mapping here (the ViT extractor only uses Transpose(1, 2) on (B, N, C));
        # fall back to XLA for those rather than faking a kernel.
        return jnp.swapaxes(x, d0, d1)

    itemsize = jnp.dtype(x.dtype).itemsize
    if x.size * itemsize < _MIN_PALLAS_BYTES:
        # Tiny inputs are dominated by pallas_call launch + pipeline prologue.
        return jnp.swapaxes(x, -2, -1)

    lead = x.shape[: nd - 2]
    M, N = x.shape[-2], x.shape[-1]
    batch = math.prod(lead) if lead else 1
    # TODO(synk): bf16 with odd full-M blocks emits pack/unpack shuffles; if that
    # ever becomes exposed (large v7x tiles), transpose channel pairs via bitcast.
    y3 = _transpose_last_two(x.reshape((batch, M, N)))
    return y3.reshape(lead + (N, M))


def transpose_ref(x: jax.Array, dim0: int, dim1: int) -> jax.Array:
    """Pure-JAX reference matching torch.Tensor.transpose(dim0, dim1)."""
    return jnp.swapaxes(x, dim0, dim1)


if __name__ == "__main__":
    key = jax.random.PRNGKey(0)

    # 1) Small ViT-style Transpose(1, 2) on (B, N, C) tokens (fast path).
    B, N, C = 2, 8, 32
    x = jax.random.normal(key, (B, N, C), dtype=jnp.float32)
    out = jax.block_until_ready(transpose(x, 1, 2))
    assert out.shape == (B, C, N), out.shape
    assert jnp.array_equal(out, transpose_ref(x, 1, 2)), "mismatch (small 3D)"

    # 2) Negative dims + leading-dim collapse (4D input, swap last two dims).
    x4 = jax.random.normal(jax.random.PRNGKey(1), (2, 3, 8, 32), jnp.float32)
    out4 = jax.block_until_ready(transpose(x4, -2, -1))
    assert out4.shape == (2, 3, 32, 8), out4.shape
    assert jnp.array_equal(out4, transpose_ref(x4, -2, -1)), "mismatch (4D)"

    # 3) Real ViT-ish shape: exercises the Pallas path with batch folding (BT>1).
    xv = jax.random.normal(jax.random.PRNGKey(2), (8, 197, 768), jnp.float32)
    outv = jax.block_until_ready(transpose(xv, 1, 2))
    assert outv.shape == (8, 768, 197), outv.shape
    assert jnp.array_equal(outv, transpose_ref(xv, 1, 2)), "mismatch (ViT, batched)"

    # 4) Masked tail tiles: both dims > tile cap, neither divisible by it.
    xt = jax.random.normal(jax.random.PRNGKey(3), (1, 1200, 1300), jnp.float32)
    outt = jax.block_until_ready(transpose(xt, 1, 2))
    assert outt.shape == (1, 1300, 1200), outt.shape
    assert jnp.array_equal(outt, transpose_ref(xt, 1, 2)), "mismatch (tail tiles)"

    # 5) Partial batch block (B not divisible by BT).
    xp = jax.random.normal(jax.random.PRNGKey(4), (9, 197, 128), jnp.float32)
    outp = jax.block_until_ready(transpose(xp, 1, 2))
    assert outp.shape == (9, 128, 197), outp.shape
    assert jnp.array_equal(outp, transpose_ref(xp, 1, 2)), "mismatch (partial batch)"

    # 6) bf16 path (packed sublanes, exact op so exact equality still holds).
    xb = jax.random.normal(jax.random.PRNGKey(5), (4, 197, 768)).astype(jnp.bfloat16)
    outb = jax.block_until_ready(transpose(xb, 1, 2))
    assert outb.shape == (4, 768, 197), outb.shape
    assert jnp.array_equal(outb, transpose_ref(xb, 1, 2)), "mismatch (bf16)"

    # 7) Non-trailing dim pair -> XLA fallback (semantics preserved).
    outnt = jax.block_until_ready(transpose(x4, 1, 3))
    assert outnt.shape == (2, 32, 8, 3), outnt.shape
    assert jnp.array_equal(outnt, transpose_ref(x4, 1, 3)), "mismatch (fallback)"

    print("KERNEL_OK")
</pallas_src>

<mosaic_0001>
module attributes {stable_mosaic.version = 11 : i64} {
  func.func @_transpose_kernel(%arg0: i32, %arg1: i32, %arg2: i32, %arg3: memref<2x197x768xf32, #tpu.memory_space<vmem>>, %arg4: memref<2x768x197xf32, #tpu.memory_space<vmem>>) attributes {dimension_semantics = [#tpu.dimension_semantics<parallel>, #tpu.dimension_semantics<parallel>, #tpu.dimension_semantics<parallel>], iteration_bounds = array<i64: 4, 1, 1>, scalar_prefetch = 0 : i64, scratch_operands = 0 : i64, tpu.core_type = #tpu.core_type<tc>, window_params = [{transform_indices = @transform_0, window_bounds = array<i64: 2, 197, 768>}, {transform_indices = @transform_1, window_bounds = array<i64: 2, 768, 197>}]} {
    %c0 = arith.constant 0 : index
    %c0_0 = arith.constant 0 : index
    %c0_1 = arith.constant 0 : index
    %0 = vector.load %arg3[%c0, %c0_0, %c0_1] : memref<2x197x768xf32, #tpu.memory_space<vmem>>, vector<2x197x768xf32>
    %1 = tpu.transpose %0, [0, 2, 1] : vector<2x197x768xf32> -> vector<2x768x197xf32>
    %c0_2 = arith.constant 0 : index
    %c0_3 = arith.constant 0 : index
    %c0_4 = arith.constant 0 : index
    %2 = vector.load %arg4[%c0_2, %c0_3, %c0_4] : memref<2x768x197xf32, #tpu.memory_space<vmem>>, vector<2x768x197xf32>
    tpu.vector_store %arg4[%c0_2, %c0_3, %c0_4], %1 {strides = array<i32>} : memref<2x768x197xf32, #tpu.memory_space<vmem>>, vector<2x768x197xf32>,
    return
  }
  func.func @transform_0(%arg0: i32, %arg1: i32, %arg2: i32) -> (i32, i32, i32) {
    %c0_i32 = arith.constant 0 : i32
    return %arg0, %arg2, %arg1 : i32, i32, i32
  }
  func.func @transform_1(%arg0: i32, %arg1: i32, %arg2: i32) -> (i32, i32, i32) {
    %c0_i32 = arith.constant 0 : i32
    return %arg0, %arg1, %arg2 : i32, i32, i32
  }
}

</mosaic_0001>

<bundles_post_ra>
// kernel: tpu_custom_call.1
= control target key start
LH: loop header
LB: loop body
LE: loop exit
PB: predicated region body
PF: predicated region fallthrough
CT: control target
= control target key end

     0   :  { %s1846_s6 = smov 0   ;;  %s1848_s7 = smov 0   ;;  %s2763_s0 = inlined_call_operand.vmem [shape: f32[8,197,768], index: 0, kind: input, shape index: {}]   ;;  %s2764_s1 = inlined_call_operand.vmem [shape: f32[8,768,197], index: 1, kind: output, shape index: {}]  }
   0x1   :  { %s1850_s8 = smov 0  }
   0x2 LB: > { %s30_s9 = sadd.s32 1, %s1830_s7  ;;  %p1778_p0 = scmp.ge.s32.totalorder %s1834_s8, 1  ;;  %s1834_s8 = sphi %s1850_s8, %s11_s8   ;;  %s1830_s7 = sphi %s1848_s7, %s2766_s7   ;;  %s1826_s6 = sphi %s1846_s6, %s2765_s6  }
   0x3   : > { %p32_p1 = scmp.ge.s32.totalorder %s30_s9, 4  ;;  %p127_p2 = scmp.lt.s32.totalorder %s1834_s8, 5 }
   0x5   : > { %s2768_s9 = smov (%p32_p1, %s30_s9), 0  ;;  %p128_p3 = pnand %p1778_p0, %p127_p2 }
   0x6   : > { %s1779_s10 = sshll.u32 (!%p128_p3), %s1826_s6, 1  ;;  %vm1272_vm0 = vcmask (!%p128_p3), 564224  }
   0x7   : > { %131 = sbr.rel (%p128_p3) target bundleno = 913 (0x391), region = 24  ;;  %p170_p4 = scmp.lt.s32.totalorder (!%p128_p3), %s1779_s10, 7 }
   0xe   : > { %s2770_s10 = smov (!%p170_p4, %s1779_s10), 7 }
   0xf   : > { %s1785_s11 = smul.u32 1200, %s2770_s10 }
  0x10   : > { %s1786_s15 = smul.u32 1536, %s2770_s10 }
  0x11   : > { %s1870_s14 = scalar_lea.vmem %s2763_s0, %s1785_s11 }
  0x12   : > { %v204_v0 = vld [vmem:[%s1870_s14 + $0x8] sm:$0xff]  ;;  %v203_v1 = vld [vmem:[%s1870_s14] sm:$0xff]  ;;  %v210_v2 = vld [vmem:[%s1870_s14 + $0x38] sm:$0xff]  ;;  %s1942_s18 = scalar_lea.vmem %s2764_s1, %s1786_s15 }
  0x13   : > { %535 = vxpose.xlu1.b32.start [1/16] %v204_v0, 128  ;;  %503 = vxpose.xlu0.b32.start [1/16] %v203_v1, 128  ;;  %v209_v3 = vld [vmem:[%s1870_s14 + $0x30] sm:$0xff]  ;;  %v216_v4 = vld [vmem:[%s1870_s14 + $0x68] sm:$0xff]  ;;  %v215_v5 = vld [vmem:[%s1870_s14 + $0x60] sm:$0xff] }
  0x14   : > { %v222_v6 = vld [vmem:[%s1870_s14 + $0x98] sm:$0xff]  ;;  %v221_v7 = vld [vmem:[%s1870_s14 + $0x90] sm:$0xff]  ;;  %v228_v8 = vld [vmem:[%s1870_s14 + $0xc8] sm:$0xff] }
  0x15   : > { %v227_v9 = vld [vmem:[%s1870_s14 + $0xc0] sm:$0xff]  ;;  %v234_v10 = vld [vmem:[%s1870_s14 + $0xf8] sm:$0xff]  ;;  %v233_v11 = vld [vmem:[%s1870_s14 + $0xf0] sm:$0xff] }
  0x16   : > { %v240_v12 = vld [vmem:[%s1870_s14 + $0x128] sm:$0xff]  ;;  %v239_v13 = vld [vmem:[%s1870_s14 + $0x120] sm:$0xff]  ;;  %v246_v14 = vld [vmem:[%s1870_s14 + $0x158] sm:$0xff] }
  0x17   : > { %536 = vxpose.xlu1.b32.cont [2/16] %v210_v2, 128  ;;  %504 = vxpose.xlu0.b32.cont [2/16] %v209_v3, 128  ;;  %v245_v15 = vld [vmem:[%s1870_s14 + $0x150] sm:$0xff]  ;;  %v252_v16 = vld [vmem:[%s1870_s14 + $0x188] sm:$0xff]  ;;  %v251_v17 = vld [vmem:[%s1870_s14 + $0x180] sm:$0xff] }
  0x18   : > { %v258_v18 = vld [vmem:[%s1870_s14 + $0x1b8] sm:$0xff]  ;;  %v257_v19 = vld [vmem:[%s1870_s14 + $0x1b0] sm:$0xff]  ;;  %v264_v20 = vld [vmem:[%s1870_s14 + $0x1e8] sm:$0xff] }
  0x19   : > { %v263_v21 = vld [vmem:[%s1870_s14 + $0x1e0] sm:$0xff]  ;;  %v270_v22 = vld [vmem:[%s1870_s14 + $0x218] sm:$0xff]  ;;  %v269_v23 = vld [vmem:[%s1870_s14 + $0x210] sm:$0xff] }
  0x1a   : > { %v276_v24 = vld [vmem:[%s1870_s14 + $0x248] sm:$0xff]  ;;  %v275_v25 = vld [vmem:[%s1870_s14 + $0x240] sm:$0xff]  ;;  %v282_v26 = vld [vmem:[%s1870_s14 + $0x278] sm:$0xff] }
  0x1b   : > { %537 = vxpose.xlu1.b32.cont [3/16] %v216_v4, 128  ;;  %505 = vxpose.xlu0.b32.cont [3/16] %v215_v5, 128  ;;  %v281_v27 = vld [vmem:[%s1870_s14 + $0x270] sm:$0xff]  ;;  %v288_v28 = vld [vmem:[%s1870_s14 + $0x2a8] sm:$0xff]  ;;  %v287_v29 = vld [vmem:[%s1870_s14 + $0x2a0] sm:$0xff] }
  0x1c   : > { %v294_v30 = vld [vmem:[%s1870_s14 + $0x2d8] sm:$0xff]  ;;  %v293_v31 = vld [vmem:[%s1870_s14 + $0x2d0] sm:$0xff]  ;;  %v212_v34 = vld [vmem:[%s1870_s14 + $0x48] sm:$0xff] }
  0x1d   : > { %v206_v32 = vld [vmem:[%s1870_s14 + $0x18] sm:$0xff]  ;;  %v205_v33 = vld [vmem:[%s1870_s14 + $0x10] sm:$0xff]  ;;  %v211_v35 = vld [vmem:[%s1870_s14 + $0x40] sm:$0xff] }
  0x1e   : > { %v218_v36 = vld [vmem:[%s1870_s14 + $0x78] sm:$0xff]  ;;  %v217_v37 = vld [vmem:[%s1870_s14 + $0x70] sm:$0xff]  ;;  %v224_v38 = vld [vmem:[%s1870_s14 + $0xa8] sm:$0xff] }
  0x1f   : > { %538 = vxpose.xlu1.b32.cont [4/16] %v222_v6, 128  ;;  %506 = vxpose.xlu0.b32.cont [4/16] %v221_v7, 128  ;;  %v223_v39 = vld [vmem:[%s1870_s14 + $0xa0] sm:$0xff]  ;;  %v230_v40 = vld [vmem:[%s1870_s14 + $0xd8] sm:$0xff]  ;;  %v229_v41 = vld [vmem:[%s1870_s14 + $0xd0] sm:$0xff] }
  0x20   : > { %v236_v42 = vld [vmem:[%s1870_s14 + $0x108] sm:$0xff]  ;;  %v235_v43 = vld [vmem:[%s1870_s14 + $0x100] sm:$0xff]  ;;  %v242_v44 = vld [vmem:[%s1870_s14 + $0x138] sm:$0xff] }
  0x21   : > { %v241_v45 = vld [vmem:[%s1870_s14 + $0x130] sm:$0xff]  ;;  %v248_v46 = vld [vmem:[%s1870_s14 + $0x168] sm:$0xff]  ;;  %v247_v47 = vld [vmem:[%s1870_s14 + $0x160] sm:$0xff] }
  0x22   : > { %v254_v48 = vld [vmem:[%s1870_s14 + $0x198] sm:$0xff]  ;;  %v253_v49 = vld [vmem:[%s1870_s14 + $0x190] sm:$0xff]  ;;  %v260_v50 = vld [vmem:[%s1870_s14 + $0x1c8] sm:$0xff] }
  0x23   : > { %539 = vxpose.xlu1.b32.cont [5/16] %v228_v8, 128  ;;  %507 = vxpose.xlu0.b32.cont [5/16] %v227_v9, 128  ;;  %v259_v51 = vld [vmem:[%s1870_s14 + $0x1c0] sm:$0xff]  ;;  %v266_v52 = vld [vmem:[%s1870_s14 + $0x1f8] sm:$0xff]  ;;  %v265_v53 = vld [vmem:[%s1870_s14 + $0x1f0] sm:$0xff] }
  0x24   : > { %v272_v54 = vld [vmem:[%s1870_s14 + $0x228] sm:$0xff]  ;;  %v271_v55 = vld [vmem:[%s1870_s14 + $0x220] sm:$0xff]  ;;  %v278_v56 = vld [vmem:[%s1870_s14 + $0x258] sm:$0xff] }
  0x25   : > { %v277_v57 = vld [vmem:[%s1870_s14 + $0x250] sm:$0xff]  ;;  %v284_v58 = vld [vmem:[%s1870_s14 + $0x288] sm:$0xff]  ;;  %v283_v59 = vld [vmem:[%s1870_s14 + $0x280] sm:$0xff] }
  0x26   : > { %v290_v60 = vld [vmem:[%s1870_s14 + $0x2b8] sm:$0xff]  ;;  %v289_v61 = vld [vmem:[%s1870_s14 + $0x2b0] sm:$0xff]  ;;  %v296_v62 = vld [vmem:[%s1870_s14 + $0x2e8] sm:$0xff] }
  0x27   : > { %540 = vxpose.xlu1.b32.cont [6/16] %v234_v10, 128  ;;  %508 = vxpose.xlu0.b32.cont [6/16] %v233_v11, 128  ;;  %v295_v63 = vld [vmem:[%s1870_s14 + $0x2e0] sm:$0xff]  ;;  %v208_v0 = vld [vmem:[%s1870_s14 + $0x28] sm:$0xff]  ;;  %v214_v4 = vld [vmem:[%s1870_s14 + $0x58] sm:$0xff] }
  0x28   : > { %v207_v1 = vld [vmem:[%s1870_s14 + $0x20] sm:$0xff]  ;;  %v213_v5 = vld [vmem:[%s1870_s14 + $0x50] sm:$0xff]  ;;  %v220_v8 = vld [vmem:[%s1870_s14 + $0x88] sm:$0xff] }
  0x29   : > { %v219_v9 = vld [vmem:[%s1870_s14 + $0x80] sm:$0xff] }
  0x2b   : > { %541 = vxpose.xlu1.b32.cont [7/16] %v240_v12, 128  ;;  %509 = vxpose.xlu0.b32.cont [7/16] %v239_v13, 128  ;;  %v226_v12 = vld [vmem:[%s1870_s14 + $0xb8] sm:$0xff]  ;;  %v225_v13 = vld [vmem:[%s1870_s14 + $0xb0] sm:$0xff] }
  0x2f   : > { %542 = vxpose.xlu1.b32.cont [8/16] %v246_v14, 128  ;;  %510 = vxpose.xlu0.b32.cont [8/16] %v245_v15, 128 }
  0x33   : > { %543 = vxpose.xlu1.b32.cont [9/16] %v252_v16, 128  ;;  %511 = vxpose.xlu0.b32.cont [9/16] %v251_v17, 128  ;;  %v232_v16 = vld [vmem:[%s1870_s14 + $0xe8] sm:$0xff]  ;;  %v231_v17 = vld [vmem:[%s1870_s14 + $0xe0] sm:$0xff] }
  0x37   : > { %544 = vxpose.xlu1.b32.cont [10/16] %v258_v18, 128  ;;  %512 = vxpose.xlu0.b32.cont [10/16] %v257_v19, 128 }
  0x3b   : > { %545 = vxpose.xlu1.b32.cont [11/16] %v264_v20, 128  ;;  %513 = vxpose.xlu0.b32.cont [11/16] %v263_v21, 128  ;;  %v238_v20 = vld [vmem:[%s1870_s14 + $0x118] sm:$0xff]  ;;  %v237_v21 = vld [vmem:[%s1870_s14 + $0x110] sm:$0xff] }
  0x3f   : > { %546 = vxpose.xlu1.b32.cont [12/16] %v270_v22, 128  ;;  %514 = vxpose.xlu0.b32.cont [12/16] %v269_v23, 128 }
  0x43   : > { %547 = vxpose.xlu1.b32.cont [13/16] %v276_v24, 128  ;;  %515 = vxpose.xlu0.b32.cont [13/16] %v275_v25, 128  ;;  %v244_v24 = vld [vmem:[%s1870_s14 + $0x148] sm:$0xff]  ;;  %v243_v25 = vld [vmem:[%s1870_s14 + $0x140] sm:$0xff] }
  0x47   : > { %548 = vxpose.xlu1.b32.cont [14/16] %v282_v26, 128  ;;  %516 = vxpose.xlu0.b32.cont [14/16] %v281_v27, 128 }
  0x4b   : > { %549 = vxpose.xlu1.b32.cont [15/16] %v288_v28, 128  ;;  %517 = vxpose.xlu0.b32.cont [15/16] %v287_v29, 128  ;;  %v250_v28 = vld [vmem:[%s1870_s14 + $0x178] sm:$0xff]  ;;  %v249_v29 = vld [vmem:[%s1870_s14 + $0x170] sm:$0xff] }
  0x4f   : > { %550 = vxpose.xlu1.b32.end [16/16] %v294_v30, 128  ;;  %518 = vxpose.xlu0.b32.end [16/16] %v293_v31, 128 }
  0x53   : > { %599 = vxpose.xlu1.b32.start [1/16] %v206_v32, 128  ;;  %567 = vxpose.xlu0.b32.start [1/16] %v205_v33, 128  ;;  %v256_v32 = vld [vmem:[%s1870_s14 + $0x1a8] sm:$0xff]  ;;  %v255_v33 = vld [vmem:[%s1870_s14 + $0x1a0] sm:$0xff] }
  0x57   : > { %600 = vxpose.xlu1.b32.cont [2/16] %v212_v34, 128  ;;  %568 = vxpose.xlu0.b32.cont [2/16] %v211_v35, 128 }
  0x5b   : > { %601 = vxpose.xlu1.b32.cont [3/16] %v218_v36, 128  ;;  %569 = vxpose.xlu0.b32.cont [3/16] %v217_v37, 128  ;;  %v262_v36 = vld [vmem:[%s1870_s14 + $0x1d8] sm:$0xff]  ;;  %v261_v37 = vld [vmem:[%s1870_s14 + $0x1d0] sm:$0xff] }
  0x5f   : > { %602 = vxpose.xlu1.b32.cont [4/16] %v224_v38, 128  ;;  %570 = vxpose.xlu0.b32.cont [4/16] %v223_v39, 128 }
  0x63   : > { %603 = vxpose.xlu1.b32.cont [5/16] %v230_v40, 128  ;;  %571 = vxpose.xlu0.b32.cont [5/16] %v229_v41, 128  ;;  %v268_v40 = vld [vmem:[%s1870_s14 + $0x208] sm:$0xff]  ;;  %v267_v41 = vld [vmem:[%s1870_s14 + $0x200] sm:$0xff] }
  0x67   : > { %604 = vxpose.xlu1.b32.cont [6/16] %v236_v42, 128  ;;  %572 = vxpose.xlu0.b32.cont [6/16] %v235_v43, 128 }
  0x6b   : > { %605 = vxpose.xlu1.b32.cont [7/16] %v242_v44, 128  ;;  %573 = vxpose.xlu0.b32.cont [7/16] %v241_v45, 128  ;;  %v274_v44 = vld [vmem:[%s1870_s14 + $0x238] sm:$0xff]  ;;  %v273_v45 = vld [vmem:[%s1870_s14 + $0x230] sm:$0xff] }
  0x6f   : > { %606 = vxpose.xlu1.b32.cont [8/16] %v248_v46, 128  ;;  %574 = vxpose.xlu0.b32.cont [8/16] %v247_v47, 128 }
  0x73   : > { %607 = vxpose.xlu1.b32.cont [9/16] %v254_v48, 128  ;;  %575 = vxpose.xlu0.b32.cont [9/16] %v253_v49, 128  ;;  %v280_v48 = vld [vmem:[%s1870_s14 + $0x268] sm:$0xff]  ;;  %v279_v49 = vld [vmem:[%s1870_s14 + $0x260] sm:$0xff] }
  0x77   : > { %608 = vxpose.xlu1.b32.cont [10/16] %v260_v50, 128  ;;  %576 = vxpose.xlu0.b32.cont [10/16] %v259_v51, 128 }
  0x7b   : > { %609 = vxpose.xlu1.b32.cont [11/16] %v266_v52, 128  ;;  %577 = vxpose.xlu0.b32.cont [11/16] %v265_v53, 128  ;;  %v286_v52 = vld [vmem:[%s1870_s14 + $0x298] sm:$0xff]  ;;  %v285_v53 = vld [vmem:[%s1870_s14 + $0x290] sm:$0xff] }
  0x7f   : > { %610 = vxpose.xlu1.b32.cont [12/16] %v272_v54, 128  ;;  %578 = vxpose.xlu0.b32.cont [12/16] %v271_v55, 128 }
  0x83   : > { %611 = vxpose.xlu1.b32.cont [13/16] %v278_v56, 128  ;;  %579 = vxpose.xlu0.b32.cont [13/16] %v277_v57, 128  ;;  %v292_v56 = vld [vmem:[%s1870_s14 + $0x2c8] sm:$0xff]  ;;  %v291_v57 = vld [vmem:[%s1870_s14 + $0x2c0] sm:$0xff] }
  0x87   : > { %612 = vxpose.xlu1.b32.cont [14/16] %v284_v58, 128  ;;  %580 = vxpose.xlu0.b32.cont [14/16] %v283_v59, 128 }
  0x8b   : > { %613 = vxpose.xlu1.b32.cont [15/16] %v290_v60, 128  ;;  %581 = vxpose.xlu0.b32.cont [15/16] %v289_v61, 128  ;;  %v298_v60 = vld [vmem:[%s1870_s14 + $0x2f8] sm:$0xff]  ;;  %v297_v61 = vld [vmem:[%s1870_s14 + $0x2f0] sm:$0xff] }
  0x8f   : > { %614 = vxpose.xlu1.b32.end [16/16] %v296_v62, 128  ;;  %582 = vxpose.xlu0.b32.end [16/16] %v295_v63, 128 }
  0x93   : > { %663 = vxpose.xlu1.b32.start [1/16] %v208_v0, 128  ;;  %v551_v2 = vpop.trf.xlu1  ;;  %631 = vxpose.xlu0.b32.start [1/16] %v207_v1, 128  ;;  %v519_v3 = vpop.trf.xlu0  ;;  %v300_v0 = vld [vmem:[%s1870_s14 + $0x308] sm:$0xff]  ;;  %v299_v1 = vld [vmem:[%s1870_s14 + $0x300] sm:$0xff] }
  0x94   : > { %1304 = vst [vmem:[%s1942_s18 + $0x100] sm:$0xff] %v551_v2  ;;  %1271 = vst [vmem:[%s1942_s18] sm:$0xff] %v519_v3 }
  0x97   : > { %664 = vxpose.xlu1.b32.cont [2/16] %v214_v4, 128  ;;  %v552_v6 = vpop.trf.xlu1  ;;  %632 = vxpose.xlu0.b32.cont [2/16] %v213_v5, 128  ;;  %v520_v7 = vpop.trf.xlu0  ;;  %v306_v4 = vld [vmem:[%s1870_s14 + $0x338] sm:$0xff]  ;;  %v305_v5 = vld [vmem:[%s1870_s14 + $0x330] sm:$0xff] }
  0x98   : > { %1306 = vst [vmem:[%s1942_s18 + $0x110] sm:$0xff] %v552_v6  ;;  %1274 = vst [vmem:[%s1942_s18 + $0x10] sm:$0xff] %v520_v7 }
  0x9b   : > { %665 = vxpose.xlu1.b32.cont [3/16] %v220_v8, 128  ;;  %v553_v10 = vpop.trf.xlu1  ;;  %633 = vxpose.xlu0.b32.cont [3/16] %v219_v9, 128  ;;  %v521_v11 = vpop.trf.xlu0  ;;  %v312_v8 = vld [vmem:[%s1870_s14 + $0x368] sm:$0xff]  ;;  %v311_v9 = vld [vmem:[%s1870_s14 + $0x360] sm:$0xff] }
  0x9c   : > { %1308 = vst [vmem:[%s1942_s18 + $0x120] sm:$0xff] %v553_v10  ;;  %1276 = vst [vmem:[%s1942_s18 + $0x20] sm:$0xff] %v521_v11 }
  0x9f   : > { %666 = vxpose.xlu1.b32.cont [4/16] %v226_v12, 128  ;;  %v554_v14 = vpop.trf.xlu1  ;;  %634 = vxpose.xlu0.b32.cont [4/16] %v225_v13, 128  ;;  %v522_v15 = vpop.trf.xlu0  ;;  %v318_v12 = vld [vmem:[%s1870_s14 + $0x398] sm:$0xff]  ;;  %v317_v13 = vld [vmem:[%s1870_s14 + $0x390] sm:$0xff] }
  0xa0   : > { %1310 = vst [vmem:[%s1942_s18 + $0x130] sm:$0xff] %v554_v14  ;;  %1278 = vst [vmem:[%s1942_s18 + $0x30] sm:$0xff] %v522_v15 }
  0xa3   : > { %667 = vxpose.xlu1.b32.cont [5/16] %v232_v16, 128  ;;  %v555_v18 = vpop.trf.xlu1  ;;  %635 = vxpose.xlu0.b32.cont [5/16] %v231_v17, 128  ;;  %v523_v19 = vpop.trf.xlu0  ;;  %v324_v16 = vld [vmem:[%s1870_s14 + $0x3c8] sm:$0xff]  ;;  %v323_v17 = vld [vmem:[%s1870_s14 + $0x3c0] sm:$0xff] }
  0xa4   : > { %1312 = vst [vmem:[%s1942_s18 + $0x140] sm:$0xff] %v555_v18  ;;  %1280 = vst [vmem:[%s1942_s18 + $0x40] sm:$0xff] %v523_v19 }
  0xa7   : > { %668 = vxpose.xlu1.b32.cont [6/16] %v238_v20, 128  ;;  %v556_v22 = vpop.trf.xlu1  ;;  %636 = vxpose.xlu0.b32.cont [6/16] %v237_v21, 128  ;;  %v524_v23 = vpop.trf.xlu0  ;;  %v330_v20 = vld [vmem:[%s1870_s14 + $0x3f8] sm:$0xff]  ;;  %v329_v21 = vld [vmem:[%s1870_s14 + $0x3f0] sm:$0xff] }
  0xa8   : > { %1314 = vst [vmem:[%s1942_s18 + $0x150] sm:$0xff] %v556_v22  ;;  %1282 = vst [vmem:[%s1942_s18 + $0x50] sm:$0xff] %v524_v23 }
  0xab   : > { %669 = vxpose.xlu1.b32.cont [7/16] %v244_v24, 128  ;;  %v557_v26 = vpop.trf.xlu1  ;;  %637 = vxpose.xlu0.b32.cont [7/16] %v243_v25, 128  ;;  %v525_v27 = vpop.trf.xlu0  ;;  %v336_v24 = vld [vmem:[%s1870_s14 + $0x428] sm:$0xff]  ;;  %v335_v25 = vld [vmem:[%s1870_s14 + $0x420] sm:$0xff] }
  0xac   : > { %1316 = vst [vmem:[%s1942_s18 + $0x160] sm:$0xff] %v557_v26  ;;  %1284 = vst [vmem:[%s1942_s18 + $0x60] sm:$0xff] %v525_v27 }
  0xaf   : > { %670 = vxpose.xlu1.b32.cont [8/16] %v250_v28, 128  ;;  %v558_v30 = vpop.trf.xlu1  ;;  %638 = vxpose.xlu0.b32.cont [8/16] %v249_v29, 128  ;;  %v526_v31 = vpop.trf.xlu0  ;;  %v342_v28 = vld [vmem:[%s1870_s14 + $0x458] sm:$0xff]  ;;  %v341_v29 = vld [vmem:[%s1870_s14 + $0x450] sm:$0xff] }
  0xb0   : > { %1318 = vst [vmem:[%s1942_s18 + $0x170] sm:$0xff] %v558_v30  ;;  %1286 = vst [vmem:[%s1942_s18 + $0x70] sm:$0xff] %v526_v31 }
  0xb3   : > { %671 = vxpose.xlu1.b32.cont [9/16] %v256_v32, 128  ;;  %v559_v34 = vpop.trf.xlu1  ;;  %639 = vxpose.xlu0.b32.cont [9/16] %v255_v33, 128  ;;  %v527_v35 = vpop.trf.xlu0  ;;  %v348_v32 = vld [vmem:[%s1870_s14 + $0x488] sm:$0x1f]  ;;  %v347_v33 = vld [vmem:[%s1870_s14 + $0x480] sm:$0x1f] }
  0xb4   : > { %1320 = vst [vmem:[%s1942_s18 + $0x180] sm:$0xff] %v559_v34  ;;  %1288 = vst [vmem:[%s1942_s18 + $0x80] sm:$0xff] %v527_v35 }
  0xb7   : > { %672 = vxpose.xlu1.b32.cont [10/16] %v262_v36, 128  ;;  %v560_v38 = vpop.trf.xlu1  ;;  %640 = vxpose.xlu0.b32.cont [10/16] %v261_v37, 128  ;;  %v528_v39 = vpop.trf.xlu0 }
  0xb8   : > { %1322 = vst [vmem:[%s1942_s18 + $0x190] sm:$0xff] %v560_v38  ;;  %1290 = vst [vmem:[%s1942_s18 + $0x90] sm:$0xff] %v528_v39 }
  0xbb   : > { %673 = vxpose.xlu1.b32.cont [11/16] %v268_v40, 128  ;;  %v561_v42 = vpop.trf.xlu1  ;;  %641 = vxpose.xlu0.b32.cont [11/16] %v267_v41, 128  ;;  %v529_v43 = vpop.trf.xlu0 }
  0xbc   : > { %1324 = vst [vmem:[%s1942_s18 + $0x1a0] sm:$0xff] %v561_v42  ;;  %1292 = vst [vmem:[%s1942_s18 + $0xa0] sm:$0xff] %v529_v43 }
  0xbf   : > { %674 = vxpose.xlu1.b32.cont [12/16] %v274_v44, 128  ;;  %v562_v46 = vpop.trf.xlu1  ;;  %642 = vxpose.xlu0.b32.cont [12/16] %v273_v45, 128  ;;  %v530_v47 = vpop.trf.xlu0 }
  0xc0   : > { %1326 = vst [vmem:[%s1942_s18 + $0x1b0] sm:$0xff] %v562_v46  ;;  %1294 = vst [vmem:[%s1942_s18 + $0xb0] sm:$0xff] %v530_v47 }
  0xc3   : > { %675 = vxpose.xlu1.b32.cont [13/16] %v280_v48, 128  ;;  %v563_v50 = vpop.trf.xlu1  ;;  %643 = vxpose.xlu0.b32.cont [13/16] %v279_v49, 128  ;;  %v531_v51 = vpop.trf.xlu0  ;;  %v302_v48 = vld [vmem:[%s1870_s14 + $0x318] sm:$0xff]  ;;  %v301_v49 = vld [vmem:[%s1870_s14 + $0x310] sm:$0xff] }
  0xc4   : > { %1328 = vst [vmem:[%s1942_s18 + $0x1c0] sm:$0xff] %v563_v50  ;;  %1296 = vst [vmem:[%s1942_s18 + $0xc0] sm:$0xff] %v531_v51 }
  0xc7   : > { %676 = vxpose.xlu1.b32.cont [14/16] %v286_v52, 128  ;;  %v564_v54 = vpop.trf.xlu1  ;;  %644 = vxpose.xlu0.b32.cont [14/16] %v285_v53, 128  ;;  %v532_v55 = vpop.trf.xlu0  ;;  %v308_v52 = vld [vmem:[%s1870_s14 + $0x348] sm:$0xff]  ;;  %v307_v53 = vld [vmem:[%s1870_s14 + $0x340] sm:$0xff] }
  0xc8   : > { %1330 = vst [vmem:[%s1942_s18 + $0x1d0] sm:$0xff] %v564_v54  ;;  %1298 = vst [vmem:[%s1942_s18 + $0xd0] sm:$0xff] %v532_v55 }
  0xcb   : > { %677 = vxpose.xlu1.b32.cont [15/16] %v292_v56, 128  ;;  %v565_v58 = vpop.trf.xlu1  ;;  %645 = vxpose.xlu0.b32.cont [15/16] %v291_v57, 128  ;;  %v533_v59 = vpop.trf.xlu0  ;;  %v314_v56 = vld [vmem:[%s1870_s14 + $0x378] sm:$0xff]  ;;  %v313_v57 = vld [vmem:[%s1870_s14 + $0x370] sm:$0xff] }
  0xcc   : > { %1332 = vst [vmem:[%s1942_s18 + $0x1e0] sm:$0xff] %v565_v58  ;;  %1300 = vst [vmem:[%s1942_s18 + $0xe0] sm:$0xff] %v533_v59 }
  0xcf   : > { %678 = vxpose.xlu1.b32.end [16/16] %v298_v60, 128  ;;  %v566_v62 = vpop.trf.xlu1  ;;  %646 = vxpose.xlu0.b32.end [16/16] %v297_v61, 128  ;;  %v534_v63 = vpop.trf.xlu0  ;;  %v320_v60 = vld [vmem:[%s1870_s14 + $0x3a8] sm:$0xff]  ;;  %v319_v61 = vld [vmem:[%s1870_s14 + $0x3a0] sm:$0xff] }
  0xd0   : > { %1334 = vst [vmem:[%s1942_s18 + $0x1f0] sm:$0xff] %v566_v62  ;;  %1302 = vst [vmem:[%s1942_s18 + $0xf0] sm:$0xff] %v534_v63 }
  0xd3   : > { %727 = vxpose.xlu1.b32.start [1/9] (short) %v300_v0, 128  ;;  %v615_v2 = vpop.trf.xlu1  ;;  %695 = vxpose.xlu0.b32.start [1/9] (short) %v299_v1, 128  ;;  %v583_v3 = vpop.trf.xlu0  ;;  %v326_v0 = vld [vmem:[%s1870_s14 + $0x3d8] sm:$0xff]  ;;  %v325_v1 = vld [vmem:[%s1870_s14 + $0x3d0] sm:$0xff] }
  0xd4   : > { %1368 = vst [vmem:[%s1942_s18 + $0x300] sm:$0xff] %v615_v2  ;;  %1336 = vst [vmem:[%s1942_s18 + $0x200] sm:$0xff] %v583_v3 }
  0xd7   : > { %728 = vxpose.xlu1.b32.cont [2/9] (short) %v306_v4, 128  ;;  %v616_v6 = vpop.trf.xlu1  ;;  %696 = vxpose.xlu0.b32.cont [2/9] (short) %v305_v5, 128  ;;  %v584_v7 = vpop.trf.xlu0  ;;  %v332_v4 = vld [vmem:[%s1870_s14 + $0x408] sm:$0xff]  ;;  %v331_v5 = vld [vmem:[%s1870_s14 + $0x400] sm:$0xff] }
  0xd8   : > { %1370 = vst [vmem:[%s1942_s18 + $0x310] sm:$0xff] %v616_v6  ;;  %1338 = vst [vmem:[%s1942_s18 + $0x210] sm:$0xff] %v584_v7 }
  0xdb   : > { %729 = vxpose.xlu1.b32.cont [3/9] (short) %v312_v8, 128  ;;  %v617_v10 = vpop.trf.xlu1  ;;  %697 = vxpose.xlu0.b32.cont [3/9] (short) %v311_v9, 128  ;;  %v585_v11 = vpop.trf.xlu0  ;;  %v338_v8 = vld [vmem:[%s1870_s14 + $0x438] sm:$0xff]  ;;  %v337_v9 = vld [vmem:[%s1870_s14 + $0x430] sm:$0xff] }
  0xdc   : > { %1372 = vst [vmem:[%s1942_s18 + $0x320] sm:$0xff] %v617_v10  ;;  %1340 = vst [vmem:[%s1942_s18 + $0x220] sm:$0xff] %v585_v11 }
  0xdf   : > { %730 = vxpose.xlu1.b32.cont [4/9] (short) %v318_v12, 128  ;;  %v618_v14 = vpop.trf.xlu1  ;;  %698 = vxpose.xlu0.b32.cont [4/9] (short) %v317_v13, 128  ;;  %v586_v15 = vpop.trf.xlu0  ;;  %v344_v12 = vld [vmem:[%s1870_s14 + $0x468] sm:$0xff]  ;;  %v343_v13 = vld [vmem:[%s1870_s14 + $0x460] sm:$0xff] }
  0xe0   : > { %1374 = vst [vmem:[%s1942_s18 + $0x330] sm:$0xff] %v618_v14  ;;  %1342 = vst [vmem:[%s1942_s18 + $0x230] sm:$0xff] %v586_v15 }
  0xe3   : > { %731 = vxpose.xlu1.b32.cont [5/9] (short) %v324_v16, 128  ;;  %v619_v18 = vpop.trf.xlu1  ;;  %699 = vxpose.xlu0.b32.cont [5/9] (short) %v323_v17, 128  ;;  %v587_v19 = vpop.trf.xlu0  ;;  %v350_v16 = vld [vmem:[%s1870_s14 + $0x498] sm:$0x1f]  ;;  %v349_v17 = vld [vmem:[%s1870_s14 + $0x490] sm:$0x1f] }
  0xe4   : > { %1376 = vst [vmem:[%s1942_s18 + $0x340] sm:$0xff] %v619_v18  ;;  %1344 = vst [vmem:[%s1942_s18 + $0x240] sm:$0xff] %v587_v19 }
  0xe7   : > { %732 = vxpose.xlu1.b32.cont [6/9] (short) %v330_v20, 128  ;;  %v620_v22 = vpop.trf.xlu1  ;;  %700 = vxpose.xlu0.b32.cont [6/9] (short) %v329_v21, 128  ;;  %v588_v23 = vpop.trf.xlu0 }
  0xe8   : > { %1378 = vst [vmem:[%s1942_s18 + $0x350] sm:$0xff] %v620_v22  ;;  %1346 = vst [vmem:[%s1942_s18 + $0x250] sm:$0xff] %v588_v23 }
  0xeb   : > { %733 = vxpose.xlu1.b32.cont [7/9] (short) %v336_v24, 128  ;;  %v621_v26 = vpop.trf.xlu1  ;;  %701 = vxpose.xlu0.b32.cont [7/9] (short) %v335_v25, 128  ;;  %v589_v27 = vpop.trf.xlu0 }
  0xec   : > { %1380 = vst [vmem:[%s1942_s18 + $0x360] sm:$0xff] %v621_v26  ;;  %1348 = vst [vmem:[%s1942_s18 + $0x260] sm:$0xff] %v589_v27 }
  0xef   : > { %734 = vxpose.xlu1.b32.cont [8/9] (short) %v342_v28, 128  ;;  %v622_v30 = vpop.trf.xlu1  ;;  %702 = vxpose.xlu0.b32.cont [8/9] (short) %v341_v29, 128  ;;  %v590_v31 = vpop.trf.xlu0 }
  0xf0   : > { %1382 = vst [vmem:[%s1942_s18 + $0x370] sm:$0xff] %v622_v30  ;;  %1350 = vst [vmem:[%s1942_s18 + $0x270] sm:$0xff] %v590_v31 }
  0xf3   : > { %735 = vxpose.xlu1.b32.end [9/9] (short) %v348_v32, 128  ;;  %v623_v34 = vpop.trf.xlu1  ;;  %703 = vxpose.xlu0.b32.end [9/9] (short) %v347_v33, 128  ;;  %v591_v35 = vpop.trf.xlu0  ;;  %v304_v32 = vld [vmem:[%s1870_s14 + $0x328] sm:$0xff]  ;;  %v303_v33 = vld [vmem:[%s1870_s14 + $0x320] sm:$0xff] }
  0xf4   : > { %1384 = vst [vmem:[%s1942_s18 + $0x380] sm:$0xff] %v623_v34  ;;  %1352 = vst [vmem:[%s1942_s18 + $0x280] sm:$0xff] %v591_v35 }
  0xf7   : > { %v624_v36 = vpop.trf.xlu1  ;;  %v592_v37 = vpop.trf.xlu0 }
  0xf8   : > { %1386 = vst [vmem:[%s1942_s18 + $0x390] sm:$0xff] %v624_v36  ;;  %1354 = vst [vmem:[%s1942_s18 + $0x290] sm:$0xff] %v592_v37  ;;  %v310_v36 = vld [vmem:[%s1870_s14 + $0x358] sm:$0xff]  ;;  %v309_v37 = vld [vmem:[%s1870_s14 + $0x350] sm:$0xff] }
  0xfb   : > { %v625_v38 = vpop.trf.xlu1  ;;  %v593_v39 = vpop.trf.xlu0 }
  0xfc   : > { %1388 = vst [vmem:[%s1942_s18 + $0x3a0] sm:$0xff] %v625_v38  ;;  %1356 = vst [vmem:[%s1942_s18 + $0x2a0] sm:$0xff] %v593_v39 }
  0xff   : > { %v626_v40 = vpop.trf.xlu1  ;;  %v594_v41 = vpop.trf.xlu0 }
 0x100   : > { %1390 = vst [vmem:[%s1942_s18 + $0x3b0] sm:$0xff] %v626_v40  ;;  %1358 = vst [vmem:[%s1942_s18 + $0x2b0] sm:$0xff] %v594_v41  ;;  %v316_v40 = vld [vmem:[%s1870_s14 + $0x388] sm:$0xff]  ;;  %v315_v41 = vld [vmem:[%s1870_s14 + $0x380] sm:$0xff] }
 0x103   : > { %v627_v42 = vpop.trf.xlu1  ;;  %v595_v43 = vpop.trf.xlu0 }
 0x104   : > { %1392 = vst [vmem:[%s1942_s18 + $0x3c0] sm:$0xff] %v627_v42  ;;  %1360 = vst [vmem:[%s1942_s18 + $0x2c0] sm:$0xff] %v595_v43 }
 0x107   : > { %v628_v44 = vpop.trf.xlu1  ;;  %v596_v45 = vpop.trf.xlu0 }
 0x108   : > { %1394 = vst [vmem:[%s1942_s18 + $0x3d0] sm:$0xff] %v628_v44  ;;  %1362 = vst [vmem:[%s1942_s18 + $0x2d0] sm:$0xff] %v596_v45  ;;  %v322_v44 = vld [vmem:[%s1870_s14 + $0x3b8] sm:$0xff]  ;;  %v321_v45 = vld [vmem:[%s1870_s14 + $0x3b0] sm:$0xff] }
 0x10b   : > { %v629_v46 = vpop.trf.xlu1  ;;  %v597_v47 = vpop.trf.xlu0 }
 0x10c   : > { %1396 = vst [vmem:[%s1942_s18 + $0x3e0] sm:$0xff] %v629_v46  ;;  %1364 = vst [vmem:[%s1942_s18 + $0x2e0] sm:$0xff] %v597_v47 }
 0x10f   : > { %v630_v50 = vpop.trf.xlu1  ;;  %v598_v51 = vpop.trf.xlu0 }
 0x110   : > { %1398 = vst [vmem:[%s1942_s18 + $0x3f0] sm:$0xff] %v630_v50  ;;  %1366 = vst [vmem:[%s1942_s18 + $0x2f0] sm:$0xff] %v598_v51  ;;  %791 = vxpose.xlu1.b32.start [1/9] (short) %v302_v48, 128  ;;  %759 = vxpose.xlu0.b32.start [1/9] (short) %v301_v49, 128  ;;  %v328_v48 = vld [vmem:[%s1870_s14 + $0x3e8] sm:$0xff]  ;;  %v327_v49 = vld [vmem:[%s1870_s14 + $0x3e0] sm:$0xff] }
 0x113   : > { %v679_v54 = vpop.trf.xlu1  ;;  %v647_v55 = vpop.trf.xlu0 }
 0x114   : > { %1432 = vst [vmem:[%s1942_s18 + $0x500] sm:$0xff] %v679_v54  ;;  %1400 = vst [vmem:[%s1942_s18 + $0x400] sm:$0xff] %v647_v55  ;;  %792 = vxpose.xlu1.b32.cont [2/9] (short) %v308_v52, 128  ;;  %760 = vxpose.xlu0.b32.cont [2/9] (short) %v307_v53, 128  ;;  %v334_v52 = vld [vmem:[%s1870_s14 + $0x418] sm:$0xff]  ;;  %v333_v53 = vld [vmem:[%s1870_s14 + $0x410] sm:$0xff] }
 0x117   : > { %v680_v58 = vpop.trf.xlu1  ;;  %v648_v59 = vpop.trf.xlu0 }
 0x118   : > { %1434 = vst [vmem:[%s1942_s18 + $0x510] sm:$0xff] %v680_v58  ;;  %1402 = vst [vmem:[%s1942_s18 + $0x410] sm:$0xff] %v648_v59  ;;  %793 = vxpose.xlu1.b32.cont [3/9] (short) %v314_v56, 128  ;;  %761 = vxpose.xlu0.b32.cont [3/9] (short) %v313_v57, 128  ;;  %v340_v56 = vld [vmem:[%s1870_s14 + $0x448] sm:$0xff]  ;;  %v339_v57 = vld [vmem:[%s1870_s14 + $0x440] sm:$0xff] }
 0x11b   : > { %v681_v62 = vpop.trf.xlu1  ;;  %v649_v63 = vpop.trf.xlu0 }
 0x11c   : > { %1436 = vst [vmem:[%s1942_s18 + $0x520] sm:$0xff] %v681_v62  ;;  %1404 = vst [vmem:[%s1942_s18 + $0x420] sm:$0xff] %v649_v63  ;;  %794 = vxpose.xlu1.b32.cont [4/9] (short) %v320_v60, 128  ;;  %762 = vxpose.xlu0.b32.cont [4/9] (short) %v319_v61, 128  ;;  %v346_v60 = vld [vmem:[%s1870_s14 + $0x478] sm:$0xff]  ;;  %v345_v61 = vld [vmem:[%s1870_s14 + $0x470] sm:$0xff] }
 0x11f   : > { %v682_v2 = vpop.trf.xlu1  ;;  %v650_v3 = vpop.trf.xlu0 }
 0x120   : > { %1438 = vst [vmem:[%s1942_s18 + $0x530] sm:$0xff] %v682_v2  ;;  %1406 = vst [vmem:[%s1942_s18 + $0x430] sm:$0xff] %v650_v3  ;;  %795 = vxpose.xlu1.b32.cont [5/9] (short) %v326_v0, 128  ;;  %763 = vxpose.xlu0.b32.cont [5/9] (short) %v325_v1, 128  ;;  %v352_v0 = vld [vmem:[%s1870_s14 + $0x4a8] sm:$0x1f]  ;;  %v351_v1 = vld [vmem:[%s1870_s14 + $0x4a0] sm:$0x1f] }
 0x123   : > { %v683_v6 = vpop.trf.xlu1  ;;  %v651_v7 = vpop.trf.xlu0 }
 0x124   : > { %1440 = vst [vmem:[%s1942_s18 + $0x540] sm:$0xff] %v683_v6  ;;  %1408 = vst [vmem:[%s1942_s18 + $0x440] sm:$0xff] %v651_v7  ;;  %796 = vxpose.xlu1.b32.cont [6/9] (short) %v332_v4, 128  ;;  %764 = vxpose.xlu0.b32.cont [6/9] (short) %v331_v5, 128 }
 0x127   : > { %v684_v10 = vpop.trf.xlu1  ;;  %v652_v11 = vpop.trf.xlu0 }
 0x128   : > { %1442 = vst [vmem:[%s1942_s18 + $0x550] sm:$0xff] %v684_v10  ;;  %1410 = vst [vmem:[%s1942_s18 + $0x450] sm:$0xff] %v652_v11  ;;  %797 = vxpose.xlu1.b32.cont [7/9] (short) %v338_v8, 128  ;;  %765 = vxpose.xlu0.b32.cont [7/9] (short) %v337_v9, 128 }
 0x12b   : > { %v685_v14 = vpop.trf.xlu1  ;;  %v653_v15 = vpop.trf.xlu0 }
 0x12c   : > { %1444 = vst [vmem:[%s1942_s18 + $0x560] sm:$0xff] %v685_v14  ;;  %1412 = vst [vmem:[%s1942_s18 + $0x460] sm:$0xff] %v653_v15  ;;  %798 = vxpose.xlu1.b32.cont [8/9] (short) %v344_v12, 128  ;;  %766 = vxpose.xlu0.b32.cont [8/9] (short) %v343_v13, 128 }
 0x12f   : > { %v686_v18 = vpop.trf.xlu1  ;;  %v654_v19 = vpop.trf.xlu0 }
 0x130   : > { %1446 = vst [vmem:[%s1942_s18 + $0x570] sm:$0xff] %v686_v18  ;;  %1414 = vst [vmem:[%s1942_s18 + $0x470] sm:$0xff] %v654_v19  ;;  %799 = vxpose.xlu1.b32.end [9/9] (short) %v350_v16, 128  ;;  %767 = vxpose.xlu0.b32.end [9/9] (short) %v349_v17, 128  ;;  %v354_v18 = vld [vmem:[%s1870_s14 + $0x4b8] sm:$0xff]  ;;  %v353_v19 = vld [vmem:[%s1870_s14 + $0x4b0] sm:$0xff] }
 0x133   : > { %v687_v20 = vpop.trf.xlu1  ;;  %v655_v21 = vpop.trf.xlu0 }
 0x134   : > { %1448 = vst [vmem:[%s1942_s18 + $0x580] sm:$0xff] %v687_v20  ;;  %1416 = vst [vmem:[%s1942_s18 + $0x480] sm:$0xff] %v655_v21 }
 0x137   : > { %v688_v22 = vpop.trf.xlu1  ;;  %v656_v23 = vpop.trf.xlu0 }
 0x138   : > { %1450 = vst [vmem:[%s1942_s18 + $0x590] sm:$0xff] %v688_v22  ;;  %1418 = vst [vmem:[%s1942_s18 + $0x490] sm:$0xff] %v656_v23  ;;  %v360_v22 = vld [vmem:[%s1870_s14 + $0x4e8] sm:$0xff]  ;;  %v359_v23 = vld [vmem:[%s1870_s14 + $0x4e0] sm:$0xff] }
 0x13b   : > { %v689_v24 = vpop.trf.xlu1  ;;  %v657_v25 = vpop.trf.xlu0 }
 0x13c   : > { %1452 = vst [vmem:[%s1942_s18 + $0x5a0] sm:$0xff] %v689_v24  ;;  %1420 = vst [vmem:[%s1942_s18 + $0x4a0] sm:$0xff] %v657_v25 }
 0x13f   : > { %v690_v26 = vpop.trf.xlu1  ;;  %v658_v27 = vpop.trf.xlu0 }
 0x140   : > { %1454 = vst [vmem:[%s1942_s18 + $0x5b0] sm:$0xff] %v690_v26  ;;  %1422 = vst [vmem:[%s1942_s18 + $0x4b0] sm:$0xff] %v658_v27  ;;  %v366_v26 = vld [vmem:[%s1870_s14 + $0x518] sm:$0xff]  ;;  %v365_v27 = vld [vmem:[%s1870_s14 + $0x510] sm:$0xff] }
 0x143   : > { %v691_v28 = vpop.trf.xlu1  ;;  %v659_v29 = vpop.trf.xlu0 }
 0x144   : > { %1456 = vst [vmem:[%s1942_s18 + $0x5c0] sm:$0xff] %v691_v28  ;;  %1424 = vst [vmem:[%s1942_s18 + $0x4c0] sm:$0xff] %v659_v29 }
 0x147   : > { %v692_v30 = vpop.trf.xlu1  ;;  %v660_v31 = vpop.trf.xlu0 }
 0x148   : > { %1458 = vst [vmem:[%s1942_s18 + $0x5d0] sm:$0xff] %v692_v30  ;;  %1426 = vst [vmem:[%s1942_s18 + $0x4d0] sm:$0xff] %v660_v31  ;;  %v372_v30 = vld [vmem:[%s1870_s14 + $0x548] sm:$0xff]  ;;  %v371_v31 = vld [vmem:[%s1870_s14 + $0x540] sm:$0xff] }
 0x14b   : > { %v693_v34 = vpop.trf.xlu1  ;;  %v661_v35 = vpop.trf.xlu0 }
 0x14c   : > { %1460 = vst [vmem:[%s1942_s18 + $0x5e0] sm:$0xff] %v693_v34  ;;  %1428 = vst [vmem:[%s1942_s18 + $0x4e0] sm:$0xff] %v661_v35  ;;  %v378_v34 = vld [vmem:[%s1870_s14 + $0x578] sm:$0xff]  ;;  %v377_v35 = vld [vmem:[%s1870_s14 + $0x570] sm:$0xff] }
 0x14d   : > { %855 = vxpose.xlu1.b32.start [1/9] (short) %v304_v32, 128  ;;  %823 = vxpose.xlu0.b32.start [1/9] (short) %v303_v33, 128 }
 0x14f   : > { %v694_v38 = vpop.trf.xlu1  ;;  %v662_v39 = vpop.trf.xlu0 }
 0x150   : > { %1462 = vst [vmem:[%s1942_s18 + $0x5f0] sm:$0xff] %v694_v38  ;;  %1430 = vst [vmem:[%s1942_s18 + $0x4f0] sm:$0xff] %v662_v39  ;;  %v384_v38 = vld [vmem:[%s1870_s14 + $0x5a8] sm:$0xff]  ;;  %v383_v39 = vld [vmem:[%s1870_s14 + $0x5a0] sm:$0xff] }
 0x151   : > { %856 = vxpose.xlu1.b32.cont [2/9] (short) %v310_v36, 128  ;;  %824 = vxpose.xlu0.b32.cont [2/9] (short) %v309_v37, 128 }
 0x153   : > { %v743_v42 = vpop.trf.xlu1  ;;  %v711_v43 = vpop.trf.xlu0 }
 0x154   : > { %1305 = vst.msk [vmem:[%s1942_s18 + $0x108] sm:$0xff] %vm1272_vm0, %v743_v42  ;;  %1273 = vst.msk [vmem:[%s1942_s18 + $0x8] sm:$0xff] %vm1272_vm0, %v711_v43  ;;  %v390_v42 = vld [vmem:[%s1870_s14 + $0x5d8] sm:$0xff]  ;;  %v389_v43 = vld [vmem:[%s1870_s14 + $0x5d0] sm:$0xff] }
 0x155   : > { %857 = vxpose.xlu1.b32.cont [3/9] (short) %v316_v40, 128  ;;  %825 = vxpose.xlu0.b32.cont [3/9] (short) %v315_v41, 128 }
 0x157   : > { %v744_v46 = vpop.trf.xlu1  ;;  %v712_v47 = vpop.trf.xlu0 }
 0x158   : > { %1307 = vst.msk [vmem:[%s1942_s18 + $0x118] sm:$0xff] %vm1272_vm0, %v744_v46  ;;  %1275 = vst.msk [vmem:[%s1942_s18 + $0x18] sm:$0xff] %vm1272_vm0, %v712_v47  ;;  %v396_v46 = vld [vmem:[%s1870_s14 + $0x608] sm:$0xff]  ;;  %v395_v47 = vld [vmem:[%s1870_s14 + $0x600] sm:$0xff] }
 0x159   : > { %858 = vxpose.xlu1.b32.cont [4/9] (short) %v322_v44, 128  ;;  %826 = vxpose.xlu0.b32.cont [4/9] (short) %v321_v45, 128 }
 0x15b   : > { %v745_v50 = vpop.trf.xlu1  ;;  %v713_v51 = vpop.trf.xlu0 }
 0x15c   : > { %1309 = vst.msk [vmem:[%s1942_s18 + $0x128] sm:$0xff] %vm1272_vm0, %v745_v50  ;;  %1277 = vst.msk [vmem:[%s1942_s18 + $0x28] sm:$0xff] %vm1272_vm0, %v713_v51  ;;  %v402_v50 = vld [vmem:[%s1870_s14 + $0x638] sm:$0xff]  ;;  %v401_v51 = vld [vmem:[%s1870_s14 + $0x630] sm:$0xff] }
 0x15d   : > { %859 = vxpose.xlu1.b32.cont [5/9] (short) %v328_v48, 128  ;;  %827 = vxpose.xlu0.b32.cont [5/9] (short) %v327_v49, 128 }
 0x15f   : > { %v746_v54 = vpop.trf.xlu1  ;;  %v714_v55 = vpop.trf.xlu0 }
 0x160   : > { %1311 = vst.msk [vmem:[%s1942_s18 + $0x138] sm:$0xff] %vm1272_vm0, %v746_v54  ;;  %1279 = vst.msk [vmem:[%s1942_s18 + $0x38] sm:$0xff] %vm1272_vm0, %v714_v55  ;;  %v408_v54 = vld [vmem:[%s1870_s14 + $0x668] sm:$0xff]  ;;  %v407_v55 = vld [vmem:[%s1870_s14 + $0x660] sm:$0xff] }
 0x161   : > { %860 = vxpose.xlu1.b32.cont [6/9] (short) %v334_v52, 128  ;;  %828 = vxpose.xlu0.b32.cont [6/9] (short) %v333_v53, 128 }
 0x163   : > { %v747_v58 = vpop.trf.xlu1  ;;  %v715_v59 = vpop.trf.xlu0 }
 0x164   : > { %1313 = vst.msk [vmem:[%s1942_s18 + $0x148] sm:$0xff] %vm1272_vm0, %v747_v58  ;;  %1281 = vst.msk [vmem:[%s1942_s18 + $0x48] sm:$0xff] %vm1272_vm0, %v715_v59  ;;  %v414_v58 = vld [vmem:[%s1870_s14 + $0x698] sm:$0xff]  ;;  %v413_v59 = vld [vmem:[%s1870_s14 + $0x690] sm:$0xff] }
 0x165   : > { %861 = vxpose.xlu1.b32.cont [7/9] (short) %v340_v56, 128  ;;  %829 = vxpose.xlu0.b32.cont [7/9] (short) %v339_v57, 128 }
 0x167   : > { %v748_v62 = vpop.trf.xlu1  ;;  %v716_v63 = vpop.trf.xlu0 }
 0x168   : > { %1315 = vst.msk [vmem:[%s1942_s18 + $0x158] sm:$0xff] %vm1272_vm0, %v748_v62  ;;  %1283 = vst.msk [vmem:[%s1942_s18 + $0x58] sm:$0xff] %vm1272_vm0, %v716_v63  ;;  %v420_v62 = vld [vmem:[%s1870_s14 + $0x6c8] sm:$0xff]  ;;  %v419_v63 = vld [vmem:[%s1870_s14 + $0x6c0] sm:$0xff] }
 0x169   : > { %862 = vxpose.xlu1.b32.cont [8/9] (short) %v346_v60, 128  ;;  %830 = vxpose.xlu0.b32.cont [8/9] (short) %v345_v61, 128 }
 0x16b   : > { %v749_v2 = vpop.trf.xlu1  ;;  %v717_v3 = vpop.trf.xlu0 }
 0x16c   : > { %1317 = vst.msk [vmem:[%s1942_s18 + $0x168] sm:$0xff] %vm1272_vm0, %v749_v2  ;;  %1285 = vst.msk [vmem:[%s1942_s18 + $0x68] sm:$0xff] %vm1272_vm0, %v717_v3  ;;  %v426_v2 = vld [vmem:[%s1870_s14 + $0x6f8] sm:$0xff]  ;;  %v425_v3 = vld [vmem:[%s1870_s14 + $0x6f0] sm:$0xff] }
 0x16d   : > { %863 = vxpose.xlu1.b32.end [9/9] (short) %v352_v0, 128  ;;  %831 = vxpose.xlu0.b32.end [9/9] (short) %v351_v1, 128 }
 0x16f   : > { %v750_v4 = vpop.trf.xlu1  ;;  %v718_v5 = vpop.trf.xlu0 }
 0x170   : > { %1319 = vst.msk [vmem:[%s1942_s18 + $0x178] sm:$0xff] %vm1272_vm0, %v750_v4  ;;  %1287 = vst.msk [vmem:[%s1942_s18 + $0x78] sm:$0xff] %vm1272_vm0, %v718_v5 }
 0x173   : > { %v751_v6 = vpop.trf.xlu1  ;;  %v719_v7 = vpop.trf.xlu0 }
 0x174   : > { %1321 = vst.msk [vmem:[%s1942_s18 + $0x188] sm:$0xff] %vm1272_vm0, %v751_v6  ;;  %1289 = vst.msk [vmem:[%s1942_s18 + $0x88] sm:$0xff] %vm1272_vm0, %v719_v7  ;;  %v432_v6 = vld [vmem:[%s1870_s14 + $0x728] sm:$0xff]  ;;  %v431_v7 = vld [vmem:[%s1870_s14 + $0x720] sm:$0xff] }
 0x177   : > { %v752_v8 = vpop.trf.xlu1  ;;  %v720_v9 = vpop.trf.xlu0 }
 0x178   : > { %1323 = vst.msk [vmem:[%s1942_s18 + $0x198] sm:$0xff] %vm1272_vm0, %v752_v8  ;;  %1291 = vst.msk [vmem:[%s1942_s18 + $0x98] sm:$0xff] %vm1272_vm0, %v720_v9 }
 0x17b   : > { %v753_v10 = vpop.trf.xlu1  ;;  %v721_v11 = vpop.trf.xlu0 }
 0x17c   : > { %1325 = vst.msk [vmem:[%s1942_s18 + $0x1a8] sm:$0xff] %vm1272_vm0, %v753_v10  ;;  %1293 = vst.msk [vmem:[%s1942_s18 + $0xa8] sm:$0xff] %vm1272_vm0, %v721_v11  ;;  %v438_v10 = vld [vmem:[%s1870_s14 + $0x758] sm:$0xff]  ;;  %v437_v11 = vld [vmem:[%s1870_s14 + $0x750] sm:$0xff] }
 0x17f   : > { %v754_v12 = vpop.trf.xlu1  ;;  %v722_v13 = vpop.trf.xlu0 }
 0x180   : > { %1327 = vst.msk [vmem:[%s1942_s18 + $0x1b8] sm:$0xff] %vm1272_vm0, %v754_v12  ;;  %1295 = vst.msk [vmem:[%s1942_s18 + $0xb8] sm:$0xff] %vm1272_vm0, %v722_v13 }
 0x183   : > { %v755_v14 = vpop.trf.xlu1  ;;  %v723_v15 = vpop.trf.xlu0 }
 0x184   : > { %1329 = vst.msk [vmem:[%s1942_s18 + $0x1c8] sm:$0xff] %vm1272_vm0, %v755_v14  ;;  %1297 = vst.msk [vmem:[%s1942_s18 + $0xc8] sm:$0xff] %vm1272_vm0, %v723_v15  ;;  %v444_v14 = vld [vmem:[%s1870_s14 + $0x788] sm:$0xff]  ;;  %v443_v15 = vld [vmem:[%s1870_s14 + $0x780] sm:$0xff] }
 0x187   : > { %v756_v16 = vpop.trf.xlu1  ;;  %v724_v17 = vpop.trf.xlu0 }
 0x188   : > { %1331 = vst.msk [vmem:[%s1942_s18 + $0x1d8] sm:$0xff] %vm1272_vm0, %v756_v16  ;;  %1299 = vst.msk [vmem:[%s1942_s18 + $0xd8] sm:$0xff] %vm1272_vm0, %v724_v17 }
 0x18b   : > { %v757_v20 = vpop.trf.xlu1  ;;  %v725_v21 = vpop.trf.xlu0  ;;  %919 = vxpose.xlu1.b32.start [1/16] %v354_v18, 128  ;;  %887 = vxpose.xlu0.b32.start [1/16] %v353_v19, 128  ;;  %v356_v18 = vld [vmem:[%s1870_s14 + $0x4c8] sm:$0xff]  ;;  %v355_v19 = vld [vmem:[%s1870_s14 + $0x4c0] sm:$0xff] }
 0x18c   : > { %1333 = vst.msk [vmem:[%s1942_s18 + $0x1e8] sm:$0xff] %vm1272_vm0, %v757_v20  ;;  %1301 = vst.msk [vmem:[%s1942_s18 + $0xe8] sm:$0xff] %vm1272_vm0, %v725_v21 }
 0x18f   : > { %v758_v24 = vpop.trf.xlu1  ;;  %v726_v25 = vpop.trf.xlu0  ;;  %920 = vxpose.xlu1.b32.cont [2/16] %v360_v22, 128  ;;  %888 = vxpose.xlu0.b32.cont [2/16] %v359_v23, 128  ;;  %v362_v22 = vld [vmem:[%s1870_s14 + $0x4f8] sm:$0xff]  ;;  %v361_v23 = vld [vmem:[%s1870_s14 + $0x4f0] sm:$0xff] }
 0x190   : > { %1335 = vst.msk [vmem:[%s1942_s18 + $0x1f8] sm:$0xff] %vm1272_vm0, %v758_v24  ;;  %1303 = vst.msk [vmem:[%s1942_s18 + $0xf8] sm:$0xff] %vm1272_vm0, %v726_v25 }
 0x193   : > { %v807_v28 = vpop.trf.xlu1  ;;  %v775_v29 = vpop.trf.xlu0  ;;  %921 = vxpose.xlu1.b32.cont [3/16] %v366_v26, 128  ;;  %889 = vxpose.xlu0.b32.cont [3/16] %v365_v27, 128  ;;  %v368_v26 = vld [vmem:[%s1870_s14 + $0x528] sm:$0xff]  ;;  %v367_v27 = vld [vmem:[%s1870_s14 + $0x520] sm:$0xff] }
 0x194   : > { %1369 = vst.msk [vmem:[%s1942_s18 + $0x308] sm:$0xff] %vm1272_vm0, %v807_v28  ;;  %1337 = vst.msk [vmem:[%s1942_s18 + $0x208] sm:$0xff] %vm1272_vm0, %v775_v29 }
 0x197   : > { %v808_v32 = vpop.trf.xlu1  ;;  %v776_v33 = vpop.trf.xlu0  ;;  %922 = vxpose.xlu1.b32.cont [4/16] %v372_v30, 128  ;;  %890 = vxpose.xlu0.b32.cont [4/16] %v371_v31, 128  ;;  %v374_v30 = vld [vmem:[%s1870_s14 + $0x558] sm:$0xff]  ;;  %v373_v31 = vld [vmem:[%s1870_s14 + $0x550] sm:$0xff] }
 0x198   : > { %1371 = vst.msk [vmem:[%s1942_s18 + $0x318] sm:$0xff] %vm1272_vm0, %v808_v32  ;;  %1339 = vst.msk [vmem:[%s1942_s18 + $0x218] sm:$0xff] %vm1272_vm0, %v776_v33 }
 0x19b   : > { %v809_v36 = vpop.trf.xlu1  ;;  %v777_v37 = vpop.trf.xlu0  ;;  %923 = vxpose.xlu1.b32.cont [5/16] %v378_v34, 128  ;;  %891 = vxpose.xlu0.b32.cont [5/16] %v377_v35, 128  ;;  %v380_v34 = vld [vmem:[%s1870_s14 + $0x588] sm:$0xff]  ;;  %v379_v35 = vld [vmem:[%s1870_s14 + $0x580] sm:$0xff] }
 0x19c   : > { %1373 = vst.msk [vmem:[%s1942_s18 + $0x328] sm:$0xff] %vm1272_vm0, %v809_v36  ;;  %1341 = vst.msk [vmem:[%s1942_s18 + $0x228] sm:$0xff] %vm1272_vm0, %v777_v37 }
 0x19f   : > { %v810_v40 = vpop.trf.xlu1  ;;  %v778_v41 = vpop.trf.xlu0  ;;  %924 = vxpose.xlu1.b32.cont [6/16] %v384_v38, 128  ;;  %892 = vxpose.xlu0.b32.cont [6/16] %v383_v39, 128  ;;  %v386_v38 = vld [vmem:[%s1870_s14 + $0x5b8] sm:$0xff]  ;;  %v385_v39 = vld [vmem:[%s1870_s14 + $0x5b0] sm:$0xff] }
 0x1a0   : > { %1375 = vst.msk [vmem:[%s1942_s18 + $0x338] sm:$0xff] %vm1272_vm0, %v810_v40  ;;  %1343 = vst.msk [vmem:[%s1942_s18 + $0x238] sm:$0xff] %vm1272_vm0, %v778_v41 }
 0x1a3   : > { %v811_v44 = vpop.trf.xlu1  ;;  %v779_v45 = vpop.trf.xlu0  ;;  %925 = vxpose.xlu1.b32.cont [7/16] %v390_v42, 128  ;;  %893 = vxpose.xlu0.b32.cont [7/16] %v389_v43, 128  ;;  %v392_v42 = vld [vmem:[%s1870_s14 + $0x5e8] sm:$0xff]  ;;  %v391_v43 = vld [vmem:[%s1870_s14 + $0x5e0] sm:$0xff] }
 0x1a4   : > { %1377 = vst.msk [vmem:[%s1942_s18 + $0x348] sm:$0xff] %vm1272_vm0, %v811_v44  ;;  %1345 = vst.msk [vmem:[%s1942_s18 + $0x248] sm:$0xff] %vm1272_vm0, %v779_v45 }
 0x1a7   : > { %v812_v48 = vpop.trf.xlu1  ;;  %v780_v49 = vpop.trf.xlu0  ;;  %926 = vxpose.xlu1.b32.cont [8/16] %v396_v46, 128  ;;  %894 = vxpose.xlu0.b32.cont [8/16] %v395_v47, 128  ;;  %v398_v46 = vld [vmem:[%s1870_s14 + $0x618] sm:$0xff]  ;;  %v397_v47 = vld [vmem:[%s1870_s14 + $0x610] sm:$0xff] }
 0x1a8   : > { %1379 = vst.msk [vmem:[%s1942_s18 + $0x358] sm:$0xff] %vm1272_vm0, %v812_v48  ;;  %1347 = vst.msk [vmem:[%s1942_s18 + $0x258] sm:$0xff] %vm1272_vm0, %v780_v49 }
 0x1ab   : > { %v813_v52 = vpop.trf.xlu1  ;;  %v781_v53 = vpop.trf.xlu0  ;;  %927 = vxpose.xlu1.b32.cont [9/16] %v402_v50, 128  ;;  %895 = vxpose.xlu0.b32.cont [9/16] %v401_v51, 128  ;;  %v404_v50 = vld [vmem:[%s1870_s14 + $0x648] sm:$0xff]  ;;  %v403_v51 = vld [vmem:[%s1870_s14 + $0x640] sm:$0xff] }
 0x1ac   : > { %1381 = vst.msk [vmem:[%s1942_s18 + $0x368] sm:$0xff] %vm1272_vm0, %v813_v52  ;;  %1349 = vst.msk [vmem:[%s1942_s18 + $0x268] sm:$0xff] %vm1272_vm0, %v781_v53 }
 0x1af   : > { %v814_v56 = vpop.trf.xlu1  ;;  %v782_v57 = vpop.trf.xlu0  ;;  %928 = vxpose.xlu1.b32.cont [10/16] %v408_v54, 128  ;;  %896 = vxpose.xlu0.b32.cont [10/16] %v407_v55, 128  ;;  %v410_v54 = vld [vmem:[%s1870_s14 + $0x678] sm:$0xff]  ;;  %v409_v55 = vld [vmem:[%s1870_s14 + $0x670] sm:$0xff] }
 0x1b0   : > { %1383 = vst.msk [vmem:[%s1942_s18 + $0x378] sm:$0xff] %vm1272_vm0, %v814_v56  ;;  %1351 = vst.msk [vmem:[%s1942_s18 + $0x278] sm:$0xff] %vm1272_vm0, %v782_v57 }
 0x1b3   : > { %v815_v60 = vpop.trf.xlu1  ;;  %v783_v61 = vpop.trf.xlu0  ;;  %929 = vxpose.xlu1.b32.cont [11/16] %v414_v58, 128  ;;  %897 = vxpose.xlu0.b32.cont [11/16] %v413_v59, 128  ;;  %v416_v58 = vld [vmem:[%s1870_s14 + $0x6a8] sm:$0xff]  ;;  %v415_v59 = vld [vmem:[%s1870_s14 + $0x6a0] sm:$0xff] }
 0x1b4   : > { %1385 = vst.msk [vmem:[%s1942_s18 + $0x388] sm:$0xff] %vm1272_vm0, %v815_v60  ;;  %1353 = vst.msk [vmem:[%s1942_s18 + $0x288] sm:$0xff] %vm1272_vm0, %v783_v61 }
 0x1b7   : > { %v816_v0 = vpop.trf.xlu1  ;;  %v784_v1 = vpop.trf.xlu0  ;;  %930 = vxpose.xlu1.b32.cont [12/16] %v420_v62, 128  ;;  %898 = vxpose.xlu0.b32.cont [12/16] %v419_v63, 128  ;;  %v422_v62 = vld [vmem:[%s1870_s14 + $0x6d8] sm:$0xff]  ;;  %v421_v63 = vld [vmem:[%s1870_s14 + $0x6d0] sm:$0xff] }
 0x1b8   : > { %1387 = vst.msk [vmem:[%s1942_s18 + $0x398] sm:$0xff] %vm1272_vm0, %v816_v0  ;;  %1355 = vst.msk [vmem:[%s1942_s18 + $0x298] sm:$0xff] %vm1272_vm0, %v784_v1 }
 0x1bb   : > { %v817_v4 = vpop.trf.xlu1  ;;  %v785_v5 = vpop.trf.xlu0  ;;  %931 = vxpose.xlu1.b32.cont [13/16] %v426_v2, 128  ;;  %899 = vxpose.xlu0.b32.cont [13/16] %v425_v3, 128  ;;  %v428_v2 = vld [vmem:[%s1870_s14 + $0x708] sm:$0xff]  ;;  %v427_v3 = vld [vmem:[%s1870_s14 + $0x700] sm:$0xff] }
 0x1bc   : > { %1389 = vst.msk [vmem:[%s1942_s18 + $0x3a8] sm:$0xff] %vm1272_vm0, %v817_v4  ;;  %1357 = vst.msk [vmem:[%s1942_s18 + $0x2a8] sm:$0xff] %vm1272_vm0, %v785_v5 }
 0x1bf   : > { %v818_v8 = vpop.trf.xlu1  ;;  %v786_v9 = vpop.trf.xlu0  ;;  %932 = vxpose.xlu1.b32.cont [14/16] %v432_v6, 128  ;;  %900 = vxpose.xlu0.b32.cont [14/16] %v431_v7, 128  ;;  %v434_v6 = vld [vmem:[%s1870_s14 + $0x738] sm:$0xff]  ;;  %v433_v7 = vld [vmem:[%s1870_s14 + $0x730] sm:$0xff] }
 0x1c0   : > { %1391 = vst.msk [vmem:[%s1942_s18 + $0x3b8] sm:$0xff] %vm1272_vm0, %v818_v8  ;;  %1359 = vst.msk [vmem:[%s1942_s18 + $0x2b8] sm:$0xff] %vm1272_vm0, %v786_v9 }
 0x1c3   : > { %v819_v12 = vpop.trf.xlu1  ;;  %v787_v13 = vpop.trf.xlu0  ;;  %933 = vxpose.xlu1.b32.cont [15/16] %v438_v10, 128  ;;  %901 = vxpose.xlu0.b32.cont [15/16] %v437_v11, 128  ;;  %v440_v10 = vld [vmem:[%s1870_s14 + $0x768] sm:$0xff]  ;;  %v439_v11 = vld [vmem:[%s1870_s14 + $0x760] sm:$0xff] }
 0x1c4   : > { %1393 = vst.msk [vmem:[%s1942_s18 + $0x3c8] sm:$0xff] %vm1272_vm0, %v819_v12  ;;  %1361 = vst.msk [vmem:[%s1942_s18 + $0x2c8] sm:$0xff] %vm1272_vm0, %v787_v13 }
 0x1c7   : > { %v820_v16 = vpop.trf.xlu1  ;;  %v788_v17 = vpop.trf.xlu0  ;;  %934 = vxpose.xlu1.b32.end [16/16] %v444_v14, 128  ;;  %902 = vxpose.xlu0.b32.end [16/16] %v443_v15, 128  ;;  %v446_v14 = vld [vmem:[%s1870_s14 + $0x798] sm:$0xff]  ;;  %v445_v15 = vld [vmem:[%s1870_s14 + $0x790] sm:$0xff] }
 0x1c8   : > { %1395 = vst.msk [vmem:[%s1942_s18 + $0x3d8] sm:$0xff] %vm1272_vm0, %v820_v16  ;;  %1363 = vst.msk [vmem:[%s1942_s18 + $0x2d8] sm:$0xff] %vm1272_vm0, %v788_v17 }
 0x1cb   : > { %v821_v20 = vpop.trf.xlu1  ;;  %v789_v21 = vpop.trf.xlu0  ;;  %983 = vxpose.xlu1.b32.start [1/16] %v356_v18, 128  ;;  %951 = vxpose.xlu0.b32.start [1/16] %v355_v19, 128  ;;  %v358_v18 = vld [vmem:[%s1870_s14 + $0x4d8] sm:$0xff]  ;;  %v357_v19 = vld [vmem:[%s1870_s14 + $0x4d0] sm:$0xff] }
 0x1cc   : > { %1397 = vst.msk [vmem:[%s1942_s18 + $0x3e8] sm:$0xff] %vm1272_vm0, %v821_v20  ;;  %1365 = vst.msk [vmem:[%s1942_s18 + $0x2e8] sm:$0xff] %vm1272_vm0, %v789_v21 }
 0x1cf   : > { %v822_v24 = vpop.trf.xlu1  ;;  %v790_v25 = vpop.trf.xlu0  ;;  %984 = vxpose.xlu1.b32.cont [2/16] %v362_v22, 128  ;;  %952 = vxpose.xlu0.b32.cont [2/16] %v361_v23, 128  ;;  %v364_v22 = vld [vmem:[%s1870_s14 + $0x508] sm:$0xff]  ;;  %v363_v23 = vld [vmem:[%s1870_s14 + $0x500] sm:$0xff] }
 0x1d0   : > { %1399 = vst.msk [vmem:[%s1942_s18 + $0x3f8] sm:$0xff] %vm1272_vm0, %v822_v24  ;;  %1367 = vst.msk [vmem:[%s1942_s18 + $0x2f8] sm:$0xff] %vm1272_vm0, %v790_v25 }
 0x1d3   : > { %v871_v28 = vpop.trf.xlu1  ;;  %v839_v29 = vpop.trf.xlu0  ;;  %985 = vxpose.xlu1.b32.cont [3/16] %v368_v26, 128  ;;  %953 = vxpose.xlu0.b32.cont [3/16] %v367_v27, 128  ;;  %v370_v26 = vld [vmem:[%s1870_s14 + $0x538] sm:$0xff]  ;;  %v369_v27 = vld [vmem:[%s1870_s14 + $0x530] sm:$0xff] }
 0x1d4   : > { %1433 = vst.msk [vmem:[%s1942_s18 + $0x508] sm:$0xff] %vm1272_vm0, %v871_v28  ;;  %1401 = vst.msk [vmem:[%s1942_s18 + $0x408] sm:$0xff] %vm1272_vm0, %v839_v29 }
 0x1d7   : > { %v872_v32 = vpop.trf.xlu1  ;;  %v840_v33 = vpop.trf.xlu0  ;;  %986 = vxpose.xlu1.b32.cont [4/16] %v374_v30, 128  ;;  %954 = vxpose.xlu0.b32.cont [4/16] %v373_v31, 128  ;;  %v376_v30 = vld [vmem:[%s1870_s14 + $0x568] sm:$0xff]  ;;  %v375_v31 = vld [vmem:[%s1870_s14 + $0x560] sm:$0xff] }
 0x1d8   : > { %1435 = vst.msk [vmem:[%s1942_s18 + $0x518] sm:$0xff] %vm1272_vm0, %v872_v32  ;;  %1403 = vst.msk [vmem:[%s1942_s18 + $0x418] sm:$0xff] %vm1272_vm0, %v840_v33 }
 0x1db   : > { %v873_v36 = vpop.trf.xlu1  ;;  %v841_v37 = vpop.trf.xlu0  ;;  %987 = vxpose.xlu1.b32.cont [5/16] %v380_v34, 128  ;;  %955 = vxpose.xlu0.b32.cont [5/16] %v379_v35, 128  ;;  %v382_v34 = vld [vmem:[%s1870_s14 + $0x598] sm:$0xff]  ;;  %v381_v35 = vld [vmem:[%s1870_s14 + $0x590] sm:$0xff] }
 0x1dc   : > { %1437 = vst.msk [vmem:[%s1942_s18 + $0x528] sm:$0xff] %vm1272_vm0, %v873_v36  ;;  %1405 = vst.msk [vmem:[%s1942_s18 + $0x428] sm:$0xff] %vm1272_vm0, %v841_v37 }
 0x1df   : > { %v874_v40 = vpop.trf.xlu1  ;;  %v842_v41 = vpop.trf.xlu0  ;;  %988 = vxpose.xlu1.b32.cont [6/16] %v386_v38, 128  ;;  %956 = vxpose.xlu0.b32.cont [6/16] %v385_v39, 128  ;;  %v388_v38 = vld [vmem:[%s1870_s14 + $0x5c8] sm:$0xff]  ;;  %v387_v39 = vld [vmem:[%s1870_s14 + $0x5c0] sm:$0xff] }
 0x1e0   : > { %1439 = vst.msk [vmem:[%s1942_s18 + $0x538] sm:$0xff] %vm1272_vm0, %v874_v40  ;;  %1407 = vst.msk [vmem:[%s1942_s18 + $0x438] sm:$0xff] %vm1272_vm0, %v842_v41 }
 0x1e3   : > { %v875_v44 = vpop.trf.xlu1  ;;  %v843_v45 = vpop.trf.xlu0  ;;  %989 = vxpose.xlu1.b32.cont [7/16] %v392_v42, 128  ;;  %957 = vxpose.xlu0.b32.cont [7/16] %v391_v43, 128  ;;  %v394_v42 = vld [vmem:[%s1870_s14 + $0x5f8] sm:$0xff]  ;;  %v393_v43 = vld [vmem:[%s1870_s14 + $0x5f0] sm:$0xff] }
 0x1e4   : > { %1441 = vst.msk [vmem:[%s1942_s18 + $0x548] sm:$0xff] %vm1272_vm0, %v875_v44  ;;  %1409 = vst.msk [vmem:[%s1942_s18 + $0x448] sm:$0xff] %vm1272_vm0, %v843_v45 }
 0x1e7   : > { %v876_v48 = vpop.trf.xlu1  ;;  %v844_v49 = vpop.trf.xlu0  ;;  %990 = vxpose.xlu1.b32.cont [8/16] %v398_v46, 128  ;;  %958 = vxpose.xlu0.b32.cont [8/16] %v397_v47, 128  ;;  %v400_v46 = vld [vmem:[%s1870_s14 + $0x628] sm:$0xff]  ;;  %v399_v47 = vld [vmem:[%s1870_s14 + $0x620] sm:$0xff] }
 0x1e8   : > { %1443 = vst.msk [vmem:[%s1942_s18 + $0x558] sm:$0xff] %vm1272_vm0, %v876_v48  ;;  %1411 = vst.msk [vmem:[%s1942_s18 + $0x458] sm:$0xff] %vm1272_vm0, %v844_v49 }
 0x1eb   : > { %v877_v52 = vpop.trf.xlu1  ;;  %v845_v53 = vpop.trf.xlu0  ;;  %991 = vxpose.xlu1.b32.cont [9/16] %v404_v50, 128  ;;  %959 = vxpose.xlu0.b32.cont [9/16] %v403_v51, 128  ;;  %v406_v50 = vld [vmem:[%s1870_s14 + $0x658] sm:$0xff]  ;;  %v405_v51 = vld [vmem:[%s1870_s14 + $0x650] sm:$0xff] }
 0x1ec   : > { %1445 = vst.msk [vmem:[%s1942_s18 + $0x568] sm:$0xff] %vm1272_vm0, %v877_v52  ;;  %1413 = vst.msk [vmem:[%s1942_s18 + $0x468] sm:$0xff] %vm1272_vm0, %v845_v53 }
 0x1ef   : > { %v878_v56 = vpop.trf.xlu1  ;;  %v846_v57 = vpop.trf.xlu0  ;;  %992 = vxpose.xlu1.b32.cont [10/16] %v410_v54, 128  ;;  %960 = vxpose.xlu0.b32.cont [10/16] %v409_v55, 128  ;;  %v412_v54 = vld [vmem:[%s1870_s14 + $0x688] sm:$0xff]  ;;  %v411_v55 = vld [vmem:[%s1870_s14 + $0x680] sm:$0xff] }
 0x1f0   : > { %1447 = vst.msk [vmem:[%s1942_s18 + $0x578] sm:$0xff] %vm1272_vm0, %v878_v56  ;;  %1415 = vst.msk [vmem:[%s1942_s18 + $0x478] sm:$0xff] %vm1272_vm0, %v846_v57 }
 0x1f3   : > { %v879_v60 = vpop.trf.xlu1  ;;  %v847_v61 = vpop.trf.xlu0  ;;  %993 = vxpose.xlu1.b32.cont [11/16] %v416_v58, 128  ;;  %961 = vxpose.xlu0.b32.cont [11/16] %v415_v59, 128  ;;  %v418_v58 = vld [vmem:[%s1870_s14 + $0x6b8] sm:$0xff]  ;;  %v417_v59 = vld [vmem:[%s1870_s14 + $0x6b0] sm:$0xff] }
 0x1f4   : > { %1449 = vst.msk [vmem:[%s1942_s18 + $0x588] sm:$0xff] %vm1272_vm0, %v879_v60  ;;  %1417 = vst.msk [vmem:[%s1942_s18 + $0x488] sm:$0xff] %vm1272_vm0, %v847_v61 }
 0x1f7   : > { %v880_v0 = vpop.trf.xlu1  ;;  %v848_v1 = vpop.trf.xlu0  ;;  %994 = vxpose.xlu1.b32.cont [12/16] %v422_v62, 128  ;;  %962 = vxpose.xlu0.b32.cont [12/16] %v421_v63, 128  ;;  %v424_v62 = vld [vmem:[%s1870_s14 + $0x6e8] sm:$0xff]  ;;  %v423_v63 = vld [vmem:[%s1870_s14 + $0x6e0] sm:$0xff] }
 0x1f8   : > { %1451 = vst.msk [vmem:[%s1942_s18 + $0x598] sm:$0xff] %vm1272_vm0, %v880_v0  ;;  %1419 = vst.msk [vmem:[%s1942_s18 + $0x498] sm:$0xff] %vm1272_vm0, %v848_v1 }
 0x1fb   : > { %v881_v4 = vpop.trf.xlu1  ;;  %v849_v5 = vpop.trf.xlu0  ;;  %995 = vxpose.xlu1.b32.cont [13/16] %v428_v2, 128  ;;  %963 = vxpose.xlu0.b32.cont [13/16] %v427_v3, 128  ;;  %v430_v2 = vld [vmem:[%s1870_s14 + $0x718] sm:$0xff]  ;;  %v429_v3 = vld [vmem:[%s1870_s14 + $0x710] sm:$0xff] }
 0x1fc   : > { %1453 = vst.msk [vmem:[%s1942_s18 + $0x5a8] sm:$0xff] %vm1272_vm0, %v881_v4  ;;  %1421 = vst.msk [vmem:[%s1942_s18 + $0x4a8] sm:$0xff] %vm1272_vm0, %v849_v5 }
 0x1ff   : > { %v882_v8 = vpop.trf.xlu1  ;;  %v850_v9 = vpop.trf.xlu0  ;;  %996 = vxpose.xlu1.b32.cont [14/16] %v434_v6, 128  ;;  %964 = vxpose.xlu0.b32.cont [14/16] %v433_v7, 128  ;;  %v436_v6 = vld [vmem:[%s1870_s14 + $0x748] sm:$0xff]  ;;  %v435_v7 = vld [vmem:[%s1870_s14 + $0x740] sm:$0xff] }
 0x200   : > { %1455 = vst.msk [vmem:[%s1942_s18 + $0x5b8] sm:$0xff] %vm1272_vm0, %v882_v8  ;;  %1423 = vst.msk [vmem:[%s1942_s18 + $0x4b8] sm:$0xff] %vm1272_vm0, %v850_v9 }
 0x203   : > { %v883_v12 = vpop.trf.xlu1  ;;  %v851_v13 = vpop.trf.xlu0  ;;  %997 = vxpose.xlu1.b32.cont [15/16] %v440_v10, 128  ;;  %965 = vxpose.xlu0.b32.cont [15/16] %v439_v11, 128  ;;  %v442_v10 = vld [vmem:[%s1870_s14 + $0x778] sm:$0xff]  ;;  %v441_v11 = vld [vmem:[%s1870_s14 + $0x770] sm:$0xff] }
 0x204   : > { %1457 = vst.msk [vmem:[%s1942_s18 + $0x5c8] sm:$0xff] %vm1272_vm0, %v883_v12  ;;  %1425 = vst.msk [vmem:[%s1942_s18 + $0x4c8] sm:$0xff] %vm1272_vm0, %v851_v13 }
 0x207   : > { %v884_v16 = vpop.trf.xlu1  ;;  %v852_v17 = vpop.trf.xlu0  ;;  %998 = vxpose.xlu1.b32.end [16/16] %v446_v14, 128  ;;  %966 = vxpose.xlu0.b32.end [16/16] %v445_v15, 128  ;;  %v448_v14 = vld [vmem:[%s1870_s14 + $0x7a8] sm:$0xff]  ;;  %v447_v15 = vld [vmem:[%s1870_s14 + $0x7a0] sm:$0xff] }
 0x208   : > { %1459 = vst.msk [vmem:[%s1942_s18 + $0x5d8] sm:$0xff] %vm1272_vm0, %v884_v16  ;;  %1427 = vst.msk [vmem:[%s1942_s18 + $0x4d8] sm:$0xff] %vm1272_vm0, %v852_v17 }
 0x20b   : > { %v885_v20 = vpop.trf.xlu1  ;;  %v853_v21 = vpop.trf.xlu0  ;;  %1047 = vxpose.xlu1.b32.start [1/16] %v358_v18, 128  ;;  %1015 = vxpose.xlu0.b32.start [1/16] %v357_v19, 128  ;;  %v450_v18 = vld [vmem:[%s1870_s14 + $0x7b8] sm:$0xff]  ;;  %v449_v19 = vld [vmem:[%s1870_s14 + $0x7b0] sm:$0xff] }
 0x20c   : > { %1461 = vst.msk [vmem:[%s1942_s18 + $0x5e8] sm:$0xff] %vm1272_vm0, %v885_v20  ;;  %1429 = vst.msk [vmem:[%s1942_s18 + $0x4e8] sm:$0xff] %vm1272_vm0, %v853_v21 }
 0x20f   : > { %v886_v24 = vpop.trf.xlu1  ;;  %v854_v25 = vpop.trf.xlu0  ;;  %1048 = vxpose.xlu1.b32.cont [2/16] %v364_v22, 128  ;;  %1016 = vxpose.xlu0.b32.cont [2/16] %v363_v23, 128  ;;  %v456_v22 = vld [vmem:[%s1870_s14 + $0x7e8] sm:$0xff]  ;;  %v455_v23 = vld [vmem:[%s1870_s14 + $0x7e0] sm:$0xff] }
 0x210   : > { %1463 = vst.msk [vmem:[%s1942_s18 + $0x5f8] sm:$0xff] %vm1272_vm0, %v886_v24  ;;  %1431 = vst.msk [vmem:[%s1942_s18 + $0x4f8] sm:$0xff] %vm1272_vm0, %v854_v25 }
 0x213   : > { %v935_v28 = vpop.trf.xlu1  ;;  %v903_v29 = vpop.trf.xlu0  ;;  %1049 = vxpose.xlu1.b32.cont [3/16] %v370_v26, 128  ;;  %1017 = vxpose.xlu0.b32.cont [3/16] %v369_v27, 128  ;;  %v462_v26 = vld [vmem:[%s1870_s14 + $0x818] sm:$0xff]  ;;  %v461_v27 = vld [vmem:[%s1870_s14 + $0x810] sm:$0xff] }
 0x214   : > { %1496 = vst [vmem:[%s1942_s18 + $0x700] sm:$0xff] %v935_v28  ;;  %1464 = vst [vmem:[%s1942_s18 + $0x600] sm:$0xff] %v903_v29 }
 0x217   : > { %v936_v32 = vpop.trf.xlu1  ;;  %v904_v33 = vpop.trf.xlu0  ;;  %1050 = vxpose.xlu1.b32.cont [4/16] %v376_v30, 128  ;;  %1018 = vxpose.xlu0.b32.cont [4/16] %v375_v31, 128  ;;  %v468_v30 = vld [vmem:[%s1870_s14 + $0x848] sm:$0xff]  ;;  %v467_v31 = vld [vmem:[%s1870_s14 + $0x840] sm:$0xff] }
 0x218   : > { %1498 = vst [vmem:[%s1942_s18 + $0x710] sm:$0xff] %v936_v32  ;;  %1466 = vst [vmem:[%s1942_s18 + $0x610] sm:$0xff] %v904_v33 }
 0x21b   : > { %v937_v36 = vpop.trf.xlu1  ;;  %v905_v37 = vpop.trf.xlu0  ;;  %1051 = vxpose.xlu1.b32.cont [5/16] %v382_v34, 128  ;;  %1019 = vxpose.xlu0.b32.cont [5/16] %v381_v35, 128  ;;  %v474_v34 = vld [vmem:[%s1870_s14 + $0x878] sm:$0xff]  ;;  %v473_v35 = vld [vmem:[%s1870_s14 + $0x870] sm:$0xff] }
 0x21c   : > { %1500 = vst [vmem:[%s1942_s18 + $0x720] sm:$0xff] %v937_v36  ;;  %1468 = vst [vmem:[%s1942_s18 + $0x620] sm:$0xff] %v905_v37 }
 0x21f   : > { %v938_v40 = vpop.trf.xlu1  ;;  %v906_v41 = vpop.trf.xlu0  ;;  %1052 = vxpose.xlu1.b32.cont [6/16] %v388_v38, 128  ;;  %1020 = vxpose.xlu0.b32.cont [6/16] %v387_v39, 128  ;;  %v480_v38 = vld [vmem:[%s1870_s14 + $0x8a8] sm:$0xff]  ;;  %v479_v39 = vld [vmem:[%s1870_s14 + $0x8a0] sm:$0xff] }
 0x220   : > { %1502 = vst [vmem:[%s1942_s18 + $0x730] sm:$0xff] %v938_v40  ;;  %1470 = vst [vmem:[%s1942_s18 + $0x630] sm:$0xff] %v906_v41 }
 0x223   : > { %v939_v44 = vpop.trf.xlu1  ;;  %v907_v45 = vpop.trf.xlu0  ;;  %1053 = vxpose.xlu1.b32.cont [7/16] %v394_v42, 128  ;;  %1021 = vxpose.xlu0.b32.cont [7/16] %v393_v43, 128  ;;  %v486_v42 = vld [vmem:[%s1870_s14 + $0x8d8] sm:$0xff]  ;;  %v485_v43 = vld [vmem:[%s1870_s14 + $0x8d0] sm:$0xff] }
 0x224   : > { %1504 = vst [vmem:[%s1942_s18 + $0x740] sm:$0xff] %v939_v44  ;;  %1472 = vst [vmem:[%s1942_s18 + $0x640] sm:$0xff] %v907_v45 }
 0x227   : > { %v940_v48 = vpop.trf.xlu1  ;;  %v908_v49 = vpop.trf.xlu0  ;;  %1054 = vxpose.xlu1.b32.cont [8/16] %v400_v46, 128  ;;  %1022 = vxpose.xlu0.b32.cont [8/16] %v399_v47, 128  ;;  %v492_v46 = vld [vmem:[%s1870_s14 + $0x908] sm:$0xff]  ;;  %v491_v47 = vld [vmem:[%s1870_s14 + $0x900] sm:$0xff] }
 0x228   : > { %1506 = vst [vmem:[%s1942_s18 + $0x750] sm:$0xff] %v940_v48  ;;  %1474 = vst [vmem:[%s1942_s18 + $0x650] sm:$0xff] %v908_v49 }
 0x22b   : > { %v941_v52 = vpop.trf.xlu1  ;;  %v909_v53 = vpop.trf.xlu0  ;;  %1055 = vxpose.xlu1.b32.cont [9/16] %v406_v50, 128  ;;  %1023 = vxpose.xlu0.b32.cont [9/16] %v405_v51, 128  ;;  %v498_v50 = vld [vmem:[%s1870_s14 + $0x938] sm:$0x1f]  ;;  %v497_v51 = vld [vmem:[%s1870_s14 + $0x930] sm:$0x1f] }
 0x22c   : > { %1508 = vst [vmem:[%s1942_s18 + $0x760] sm:$0xff] %v941_v52  ;;  %1476 = vst [vmem:[%s1942_s18 + $0x660] sm:$0xff] %v909_v53 }
 0x22f   : > { %v942_v56 = vpop.trf.xlu1  ;;  %v910_v57 = vpop.trf.xlu0  ;;  %1056 = vxpose.xlu1.b32.cont [10/16] %v412_v54, 128  ;;  %1024 = vxpose.xlu0.b32.cont [10/16] %v411_v55, 128 }
 0x230   : > { %1510 = vst [vmem:[%s1942_s18 + $0x770] sm:$0xff] %v942_v56  ;;  %1478 = vst [vmem:[%s1942_s18 + $0x670] sm:$0xff] %v910_v57 }
 0x233   : > { %v943_v60 = vpop.trf.xlu1  ;;  %v911_v61 = vpop.trf.xlu0  ;;  %1057 = vxpose.xlu1.b32.cont [11/16] %v418_v58, 128  ;;  %1025 = vxpose.xlu0.b32.cont [11/16] %v417_v59, 128 }
 0x234   : > { %1512 = vst [vmem:[%s1942_s18 + $0x780] sm:$0xff] %v943_v60  ;;  %1480 = vst [vmem:[%s1942_s18 + $0x680] sm:$0xff] %v911_v61 }
 0x237   : > { %v944_v0 = vpop.trf.xlu1  ;;  %v912_v1 = vpop.trf.xlu0  ;;  %1058 = vxpose.xlu1.b32.cont [12/16] %v424_v62, 128  ;;  %1026 = vxpose.xlu0.b32.cont [12/16] %v423_v63, 128 }
 0x238   : > { %1514 = vst [vmem:[%s1942_s18 + $0x790] sm:$0xff] %v944_v0  ;;  %1482 = vst [vmem:[%s1942_s18 + $0x690] sm:$0xff] %v912_v1 }
 0x23b   : > { %v945_v4 = vpop.trf.xlu1  ;;  %v913_v5 = vpop.trf.xlu0  ;;  %1059 = vxpose.xlu1.b32.cont [13/16] %v430_v2, 128  ;;  %1027 = vxpose.xlu0.b32.cont [13/16] %v429_v3, 128 }
 0x23c   : > { %1516 = vst [vmem:[%s1942_s18 + $0x7a0] sm:$0xff] %v945_v4  ;;  %1484 = vst [vmem:[%s1942_s18 + $0x6a0] sm:$0xff] %v913_v5  ;;  %v452_v4 = vld [vmem:[%s1870_s14 + $0x7c8] sm:$0xff]  ;;  %v451_v5 = vld [vmem:[%s1870_s14 + $0x7c0] sm:$0xff] }
 0x23f   : > { %v946_v8 = vpop.trf.xlu1  ;;  %v914_v9 = vpop.trf.xlu0  ;;  %1060 = vxpose.xlu1.b32.cont [14/16] %v436_v6, 128  ;;  %1028 = vxpose.xlu0.b32.cont [14/16] %v435_v7, 128 }
 0x240   : > { %1518 = vst [vmem:[%s1942_s18 + $0x7b0] sm:$0xff] %v946_v8  ;;  %1486 = vst [vmem:[%s1942_s18 + $0x6b0] sm:$0xff] %v914_v9  ;;  %v458_v8 = vld [vmem:[%s1870_s14 + $0x7f8] sm:$0xff]  ;;  %v457_v9 = vld [vmem:[%s1870_s14 + $0x7f0] sm:$0xff] }
 0x243   : > { %v947_v12 = vpop.trf.xlu1  ;;  %v915_v13 = vpop.trf.xlu0  ;;  %1061 = vxpose.xlu1.b32.cont [15/16] %v442_v10, 128  ;;  %1029 = vxpose.xlu0.b32.cont [15/16] %v441_v11, 128 }
 0x244   : > { %1520 = vst [vmem:[%s1942_s18 + $0x7c0] sm:$0xff] %v947_v12  ;;  %1488 = vst [vmem:[%s1942_s18 + $0x6c0] sm:$0xff] %v915_v13  ;;  %v464_v12 = vld [vmem:[%s1870_s14 + $0x828] sm:$0xff]  ;;  %v463_v13 = vld [vmem:[%s1870_s14 + $0x820] sm:$0xff] }
 0x247   : > { %v948_v16 = vpop.trf.xlu1  ;;  %v916_v17 = vpop.trf.xlu0  ;;  %1062 = vxpose.xlu1.b32.end [16/16] %v448_v14, 128  ;;  %1030 = vxpose.xlu0.b32.end [16/16] %v447_v15, 128 }
 0x248   : > { %1522 = vst [vmem:[%s1942_s18 + $0x7d0] sm:$0xff] %v948_v16  ;;  %1490 = vst [vmem:[%s1942_s18 + $0x6d0] sm:$0xff] %v916_v17  ;;  %v470_v16 = vld [vmem:[%s1870_s14 + $0x858] sm:$0xff]  ;;  %v469_v17 = vld [vmem:[%s1870_s14 + $0x850] sm:$0xff] }
 0x24b   : > { %v949_v20 = vpop.trf.xlu1  ;;  %v917_v21 = vpop.trf.xlu0  ;;  %1111 = vxpose.xlu1.b32.start [1/9] (short) %v450_v18, 128  ;;  %1079 = vxpose.xlu0.b32.start [1/9] (short) %v449_v19, 128 }
 0x24c   : > { %1524 = vst [vmem:[%s1942_s18 + $0x7e0] sm:$0xff] %v949_v20  ;;  %1492 = vst [vmem:[%s1942_s18 + $0x6e0] sm:$0xff] %v917_v21  ;;  %v476_v20 = vld [vmem:[%s1870_s14 + $0x888] sm:$0xff]  ;;  %v475_v21 = vld [vmem:[%s1870_s14 + $0x880] sm:$0xff] }
 0x24f   : > { %v950_v24 = vpop.trf.xlu1  ;;  %v918_v25 = vpop.trf.xlu0  ;;  %1112 = vxpose.xlu1.b32.cont [2/9] (short) %v456_v22, 128  ;;  %1080 = vxpose.xlu0.b32.cont [2/9] (short) %v455_v23, 128 }
 0x250   : > { %1526 = vst [vmem:[%s1942_s18 + $0x7f0] sm:$0xff] %v950_v24  ;;  %1494 = vst [vmem:[%s1942_s18 + $0x6f0] sm:$0xff] %v918_v25  ;;  %v482_v24 = vld [vmem:[%s1870_s14 + $0x8b8] sm:$0xff]  ;;  %v481_v25 = vld [vmem:[%s1870_s14 + $0x8b0] sm:$0xff] }
 0x253   : > { %v999_v28 = vpop.trf.xlu1  ;;  %v967_v29 = vpop.trf.xlu0  ;;  %1113 = vxpose.xlu1.b32.cont [3/9] (short) %v462_v26, 128  ;;  %1081 = vxpose.xlu0.b32.cont [3/9] (short) %v461_v27, 128 }
 0x254   : > { %1560 = vst [vmem:[%s1942_s18 + $0x900] sm:$0xff] %v999_v28  ;;  %1528 = vst [vmem:[%s1942_s18 + $0x800] sm:$0xff] %v967_v29  ;;  %v488_v28 = vld [vmem:[%s1870_s14 + $0x8e8] sm:$0xff]  ;;  %v487_v29 = vld [vmem:[%s1870_s14 + $0x8e0] sm:$0xff] }
 0x257   : > { %v1000_v32 = vpop.trf.xlu1  ;;  %v968_v33 = vpop.trf.xlu0  ;;  %1114 = vxpose.xlu1.b32.cont [4/9] (short) %v468_v30, 128  ;;  %1082 = vxpose.xlu0.b32.cont [4/9] (short) %v467_v31, 128 }
 0x258   : > { %1562 = vst [vmem:[%s1942_s18 + $0x910] sm:$0xff] %v1000_v32  ;;  %1530 = vst [vmem:[%s1942_s18 + $0x810] sm:$0xff] %v968_v33  ;;  %v494_v32 = vld [vmem:[%s1870_s14 + $0x918] sm:$0xff]  ;;  %v493_v33 = vld [vmem:[%s1870_s14 + $0x910] sm:$0xff] }
 0x25b   : > { %v1001_v36 = vpop.trf.xlu1  ;;  %v969_v37 = vpop.trf.xlu0  ;;  %1115 = vxpose.xlu1.b32.cont [5/9] (short) %v474_v34, 128  ;;  %1083 = vxpose.xlu0.b32.cont [5/9] (short) %v473_v35, 128 }
 0x25c   : > { %1564 = vst [vmem:[%s1942_s18 + $0x920] sm:$0xff] %v1001_v36  ;;  %1532 = vst [vmem:[%s1942_s18 + $0x820] sm:$0xff] %v969_v37  ;;  %v500_v36 = vld [vmem:[%s1870_s14 + $0x948] sm:$0x1f]  ;;  %v499_v37 = vld [vmem:[%s1870_s14 + $0x940] sm:$0x1f] }
 0x25f   : > { %v1002_v40 = vpop.trf.xlu1  ;;  %v970_v41 = vpop.trf.xlu0  ;;  %1116 = vxpose.xlu1.b32.cont [6/9] (short) %v480_v38, 128  ;;  %1084 = vxpose.xlu0.b32.cont [6/9] (short) %v479_v39, 128 }
 0x260   : > { %1566 = vst [vmem:[%s1942_s18 + $0x930] sm:$0xff] %v1002_v40  ;;  %1534 = vst [vmem:[%s1942_s18 + $0x830] sm:$0xff] %v970_v41 }
 0x263   : > { %v1003_v44 = vpop.trf.xlu1  ;;  %v971_v45 = vpop.trf.xlu0  ;;  %1117 = vxpose.xlu1.b32.cont [7/9] (short) %v486_v42, 128  ;;  %1085 = vxpose.xlu0.b32.cont [7/9] (short) %v485_v43, 128 }
 0x264   : > { %1568 = vst [vmem:[%s1942_s18 + $0x940] sm:$0xff] %v1003_v44  ;;  %1536 = vst [vmem:[%s1942_s18 + $0x840] sm:$0xff] %v971_v45 }
 0x267   : > { %v1004_v48 = vpop.trf.xlu1  ;;  %v972_v49 = vpop.trf.xlu0  ;;  %1118 = vxpose.xlu1.b32.cont [8/9] (short) %v492_v46, 128  ;;  %1086 = vxpose.xlu0.b32.cont [8/9] (short) %v491_v47, 128 }
 0x268   : > { %1570 = vst [vmem:[%s1942_s18 + $0x950] sm:$0xff] %v1004_v48  ;;  %1538 = vst [vmem:[%s1942_s18 + $0x850] sm:$0xff] %v972_v49 }
 0x26b   : > { %v1005_v52 = vpop.trf.xlu1  ;;  %v973_v53 = vpop.trf.xlu0  ;;  %1119 = vxpose.xlu1.b32.end [9/9] (short) %v498_v50, 128  ;;  %1087 = vxpose.xlu0.b32.end [9/9] (short) %v497_v51, 128 }
 0x26c   : > { %1572 = vst [vmem:[%s1942_s18 + $0x960] sm:$0xff] %v1005_v52  ;;  %1540 = vst [vmem:[%s1942_s18 + $0x860] sm:$0xff] %v973_v53 }
 0x26f   : > { %v1006_v54 = vpop.trf.xlu1  ;;  %v974_v55 = vpop.trf.xlu0 }
 0x270   : > { %1574 = vst [vmem:[%s1942_s18 + $0x970] sm:$0xff] %v1006_v54  ;;  %1542 = vst [vmem:[%s1942_s18 + $0x870] sm:$0xff] %v974_v55  ;;  %v454_v54 = vld [vmem:[%s1870_s14 + $0x7d8] sm:$0xff]  ;;  %v453_v55 = vld [vmem:[%s1870_s14 + $0x7d0] sm:$0xff] }
 0x273   : > { %v1007_v56 = vpop.trf.xlu1  ;;  %v975_v57 = vpop.trf.xlu0 }
 0x274   : > { %1576 = vst [vmem:[%s1942_s18 + $0x980] sm:$0xff] %v1007_v56  ;;  %1544 = vst [vmem:[%s1942_s18 + $0x880] sm:$0xff] %v975_v57 }
 0x277   : > { %v1008_v58 = vpop.trf.xlu1  ;;  %v976_v59 = vpop.trf.xlu0 }
 0x278   : > { %1578 = vst [vmem:[%s1942_s18 + $0x990] sm:$0xff] %v1008_v58  ;;  %1546 = vst [vmem:[%s1942_s18 + $0x890] sm:$0xff] %v976_v59  ;;  %v460_v58 = vld [vmem:[%s1870_s14 + $0x808] sm:$0xff]  ;;  %v459_v59 = vld [vmem:[%s1870_s14 + $0x800] sm:$0xff] }
 0x27b   : > { %v1009_v60 = vpop.trf.xlu1  ;;  %v977_v61 = vpop.trf.xlu0 }
 0x27c   : > { %1580 = vst [vmem:[%s1942_s18 + $0x9a0] sm:$0xff] %v1009_v60  ;;  %1548 = vst [vmem:[%s1942_s18 + $0x8a0] sm:$0xff] %v977_v61 }
 0x27f   : > { %v1010_v62 = vpop.trf.xlu1  ;;  %v978_v63 = vpop.trf.xlu0 }
 0x280   : > { %1582 = vst [vmem:[%s1942_s18 + $0x9b0] sm:$0xff] %v1010_v62  ;;  %1550 = vst [vmem:[%s1942_s18 + $0x8b0] sm:$0xff] %v978_v63  ;;  %v466_v62 = vld [vmem:[%s1870_s14 + $0x838] sm:$0xff]  ;;  %v465_v63 = vld [vmem:[%s1870_s14 + $0x830] sm:$0xff] }
 0x283   : > { %v1011_v0 = vpop.trf.xlu1  ;;  %v979_v1 = vpop.trf.xlu0 }
 0x284   : > { %1584 = vst [vmem:[%s1942_s18 + $0x9c0] sm:$0xff] %v1011_v0  ;;  %1552 = vst [vmem:[%s1942_s18 + $0x8c0] sm:$0xff] %v979_v1 }
 0x287   : > { %v1012_v2 = vpop.trf.xlu1  ;;  %v980_v3 = vpop.trf.xlu0 }
 0x288   : > { %1586 = vst [vmem:[%s1942_s18 + $0x9d0] sm:$0xff] %v1012_v2  ;;  %1554 = vst [vmem:[%s1942_s18 + $0x8d0] sm:$0xff] %v980_v3  ;;  %v472_v2 = vld [vmem:[%s1870_s14 + $0x868] sm:$0xff]  ;;  %v471_v3 = vld [vmem:[%s1870_s14 + $0x860] sm:$0xff] }
 0x28b   : > { %v1013_v6 = vpop.trf.xlu1  ;;  %v981_v7 = vpop.trf.xlu0  ;;  %1175 = vxpose.xlu1.b32.start [1/9] (short) %v452_v4, 128  ;;  %1143 = vxpose.xlu0.b32.start [1/9] (short) %v451_v5, 128 }
 0x28c   : > { %1588 = vst [vmem:[%s1942_s18 + $0x9e0] sm:$0xff] %v1013_v6  ;;  %1556 = vst [vmem:[%s1942_s18 + $0x8e0] sm:$0xff] %v981_v7  ;;  %v478_v6 = vld [vmem:[%s1870_s14 + $0x898] sm:$0xff]  ;;  %v477_v7 = vld [vmem:[%s1870_s14 + $0x890] sm:$0xff] }
 0x28f   : > { %v1014_v10 = vpop.trf.xlu1  ;;  %v982_v11 = vpop.trf.xlu0  ;;  %1176 = vxpose.xlu1.b32.cont [2/9] (short) %v458_v8, 128  ;;  %1144 = vxpose.xlu0.b32.cont [2/9] (short) %v457_v9, 128 }
 0x290   : > { %1590 = vst [vmem:[%s1942_s18 + $0x9f0] sm:$0xff] %v1014_v10  ;;  %1558 = vst [vmem:[%s1942_s18 + $0x8f0] sm:$0xff] %v982_v11  ;;  %v484_v10 = vld [vmem:[%s1870_s14 + $0x8c8] sm:$0xff]  ;;  %v483_v11 = vld [vmem:[%s1870_s14 + $0x8c0] sm:$0xff] }
 0x293   : > { %v1063_v14 = vpop.trf.xlu1  ;;  %v1031_v15 = vpop.trf.xlu0  ;;  %1177 = vxpose.xlu1.b32.cont [3/9] (short) %v464_v12, 128  ;;  %1145 = vxpose.xlu0.b32.cont [3/9] (short) %v463_v13, 128 }
 0x294   : > { %1624 = vst [vmem:[%s1942_s18 + $0xb00] sm:$0xff] %v1063_v14  ;;  %1592 = vst [vmem:[%s1942_s18 + $0xa00] sm:$0xff] %v1031_v15  ;;  %v490_v14 = vld [vmem:[%s1870_s14 + $0x8f8] sm:$0xff]  ;;  %v489_v15 = vld [vmem:[%s1870_s14 + $0x8f0] sm:$0xff] }
 0x297   : > { %v1064_v18 = vpop.trf.xlu1  ;;  %v1032_v19 = vpop.trf.xlu0  ;;  %1178 = vxpose.xlu1.b32.cont [4/9] (short) %v470_v16, 128  ;;  %1146 = vxpose.xlu0.b32.cont [4/9] (short) %v469_v17, 128 }
 0x298   : > { %1626 = vst [vmem:[%s1942_s18 + $0xb10] sm:$0xff] %v1064_v18  ;;  %1594 = vst [vmem:[%s1942_s18 + $0xa10] sm:$0xff] %v1032_v19  ;;  %v496_v18 = vld [vmem:[%s1870_s14 + $0x928] sm:$0xff]  ;;  %v495_v19 = vld [vmem:[%s1870_s14 + $0x920] sm:$0xff] }
 0x29b   : > { %v1065_v22 = vpop.trf.xlu1  ;;  %v1033_v23 = vpop.trf.xlu0  ;;  %1179 = vxpose.xlu1.b32.cont [5/9] (short) %v476_v20, 128  ;;  %1147 = vxpose.xlu0.b32.cont [5/9] (short) %v475_v21, 128 }
 0x29c   : > { %1628 = vst [vmem:[%s1942_s18 + $0xb20] sm:$0xff] %v1065_v22  ;;  %1596 = vst [vmem:[%s1942_s18 + $0xa20] sm:$0xff] %v1033_v23  ;;  %v502_v22 = vld [vmem:[%s1870_s14 + $0x958] sm:$0x1f]  ;;  %v501_v23 = vld [vmem:[%s1870_s14 + $0x950] sm:$0x1f] }
 0x29f   : > { %v1066_v26 = vpop.trf.xlu1  ;;  %v1034_v27 = vpop.trf.xlu0  ;;  %1180 = vxpose.xlu1.b32.cont [6/9] (short) %v482_v24, 128  ;;  %1148 = vxpose.xlu0.b32.cont [6/9] (short) %v481_v25, 128 }
 0x2a0   : > { %1630 = vst [vmem:[%s1942_s18 + $0xb30] sm:$0xff] %v1066_v26  ;;  %1598 = vst [vmem:[%s1942_s18 + $0xa30] sm:$0xff] %v1034_v27 }
 0x2a3   : > { %v1067_v30 = vpop.trf.xlu1  ;;  %v1035_v31 = vpop.trf.xlu0  ;;  %1181 = vxpose.xlu1.b32.cont [7/9] (short) %v488_v28, 128  ;;  %1149 = vxpose.xlu0.b32.cont [7/9] (short) %v487_v29, 128 }
 0x2a4   : > { %1632 = vst [vmem:[%s1942_s18 + $0xb40] sm:$0xff] %v1067_v30  ;;  %1600 = vst [vmem:[%s1942_s18 + $0xa40] sm:$0xff] %v1035_v31 }
 0x2a7   : > { %v1068_v34 = vpop.trf.xlu1  ;;  %v1036_v35 = vpop.trf.xlu0  ;;  %1182 = vxpose.xlu1.b32.cont [8/9] (short) %v494_v32, 128  ;;  %1150 = vxpose.xlu0.b32.cont [8/9] (short) %v493_v33, 128 }
 0x2a8   : > { %1634 = vst [vmem:[%s1942_s18 + $0xb50] sm:$0xff] %v1068_v34  ;;  %1602 = vst [vmem:[%s1942_s18 + $0xa50] sm:$0xff] %v1036_v35 }
 0x2ab   : > { %v1069_v38 = vpop.trf.xlu1  ;;  %v1037_v39 = vpop.trf.xlu0  ;;  %1183 = vxpose.xlu1.b32.end [9/9] (short) %v500_v36, 128  ;;  %1151 = vxpose.xlu0.b32.end [9/9] (short) %v499_v37, 128 }
 0x2ac   : > { %1636 = vst [vmem:[%s1942_s18 + $0xb60] sm:$0xff] %v1069_v38  ;;  %1604 = vst [vmem:[%s1942_s18 + $0xa60] sm:$0xff] %v1037_v39 }
 0x2af   : > { %v1070_v40 = vpop.trf.xlu1  ;;  %v1038_v41 = vpop.trf.xlu0 }
 0x2b0   : > { %1638 = vst [vmem:[%s1942_s18 + $0xb70] sm:$0xff] %v1070_v40  ;;  %1606 = vst [vmem:[%s1942_s18 + $0xa70] sm:$0xff] %v1038_v41 }
 0x2b3   : > { %v1071_v42 = vpop.trf.xlu1  ;;  %v1039_v43 = vpop.trf.xlu0 }
 0x2b4   : > { %1640 = vst [vmem:[%s1942_s18 + $0xb80] sm:$0xff] %v1071_v42  ;;  %1608 = vst [vmem:[%s1942_s18 + $0xa80] sm:$0xff] %v1039_v43 }
 0x2b7   : > { %v1072_v44 = vpop.trf.xlu1  ;;  %v1040_v45 = vpop.trf.xlu0 }
 0x2b8   : > { %1642 = vst [vmem:[%s1942_s18 + $0xb90] sm:$0xff] %v1072_v44  ;;  %1610 = vst [vmem:[%s1942_s18 + $0xa90] sm:$0xff] %v1040_v45 }
 0x2bb   : > { %v1073_v46 = vpop.trf.xlu1  ;;  %v1041_v47 = vpop.trf.xlu0 }
 0x2bc   : > { %1644 = vst [vmem:[%s1942_s18 + $0xba0] sm:$0xff] %v1073_v46  ;;  %1612 = vst [vmem:[%s1942_s18 + $0xaa0] sm:$0xff] %v1041_v47 }
 0x2bf   : > { %v1074_v48 = vpop.trf.xlu1  ;;  %v1042_v49 = vpop.trf.xlu0 }
 0x2c0   : > { %1646 = vst [vmem:[%s1942_s18 + $0xbb0] sm:$0xff] %v1074_v48  ;;  %1614 = vst [vmem:[%s1942_s18 + $0xab0] sm:$0xff] %v1042_v49 }
 0x2c3   : > { %v1075_v50 = vpop.trf.xlu1  ;;  %v1043_v51 = vpop.trf.xlu0 }
 0x2c4   : > { %1648 = vst [vmem:[%s1942_s18 + $0xbc0] sm:$0xff] %v1075_v50  ;;  %1616 = vst [vmem:[%s1942_s18 + $0xac0] sm:$0xff] %v1043_v51 }
 0x2c7   : > { %v1076_v52 = vpop.trf.xlu1  ;;  %v1044_v53 = vpop.trf.xlu0 }
 0x2c8   : > { %1650 = vst [vmem:[%s1942_s18 + $0xbd0] sm:$0xff] %v1076_v52  ;;  %1618 = vst [vmem:[%s1942_s18 + $0xad0] sm:$0xff] %v1044_v53 }
 0x2cb   : > { %v1077_v56 = vpop.trf.xlu1  ;;  %v1045_v57 = vpop.trf.xlu0  ;;  %1239 = vxpose.xlu1.b32.start [1/9] (short) %v454_v54, 128  ;;  %1207 = vxpose.xlu0.b32.start [1/9] (short) %v453_v55, 128 }
 0x2cc   : > { %1652 = vst [vmem:[%s1942_s18 + $0xbe0] sm:$0xff] %v1077_v56  ;;  %1620 = vst [vmem:[%s1942_s18 + $0xae0] sm:$0xff] %v1045_v57 }
 0x2cf   : > { %v1078_v60 = vpop.trf.xlu1  ;;  %v1046_v61 = vpop.trf.xlu0  ;;  %1240 = vxpose.xlu1.b32.cont [2/9] (short) %v460_v58, 128  ;;  %1208 = vxpose.xlu0.b32.cont [2/9] (short) %v459_v59, 128 }
 0x2d0   : > { %1654 = vst [vmem:[%s1942_s18 + $0xbf0] sm:$0xff] %v1078_v60  ;;  %1622 = vst [vmem:[%s1942_s18 + $0xaf0] sm:$0xff] %v1046_v61 }
 0x2d3   : > { %v1127_v0 = vpop.trf.xlu1  ;;  %v1095_v1 = vpop.trf.xlu0  ;;  %1241 = vxpose.xlu1.b32.cont [3/9] (short) %v466_v62, 128  ;;  %1209 = vxpose.xlu0.b32.cont [3/9] (short) %v465_v63, 128 }
 0x2d4   : > { %1497 = vst.msk [vmem:[%s1942_s18 + $0x708] sm:$0xff] %vm1272_vm0, %v1127_v0  ;;  %1465 = vst.msk [vmem:[%s1942_s18 + $0x608] sm:$0xff] %vm1272_vm0, %v1095_v1 }
 0x2d7   : > { %v1128_v4 = vpop.trf.xlu1  ;;  %v1096_v5 = vpop.trf.xlu0  ;;  %1242 = vxpose.xlu1.b32.cont [4/9] (short) %v472_v2, 128  ;;  %1210 = vxpose.xlu0.b32.cont [4/9] (short) %v471_v3, 128 }
 0x2d8   : > { %1499 = vst.msk [vmem:[%s1942_s18 + $0x718] sm:$0xff] %vm1272_vm0, %v1128_v4  ;;  %1467 = vst.msk [vmem:[%s1942_s18 + $0x618] sm:$0xff] %vm1272_vm0, %v1096_v5 }
 0x2db   : > { %v1129_v8 = vpop.trf.xlu1  ;;  %v1097_v9 = vpop.trf.xlu0  ;;  %1243 = vxpose.xlu1.b32.cont [5/9] (short) %v478_v6, 128  ;;  %1211 = vxpose.xlu0.b32.cont [5/9] (short) %v477_v7, 128 }
 0x2dc   : > { %1501 = vst.msk [vmem:[%s1942_s18 + $0x728] sm:$0xff] %vm1272_vm0, %v1129_v8  ;;  %1469 = vst.msk [vmem:[%s1942_s18 + $0x628] sm:$0xff] %vm1272_vm0, %v1097_v9 }
 0x2df   : > { %v1130_v12 = vpop.trf.xlu1  ;;  %v1098_v13 = vpop.trf.xlu0  ;;  %1244 = vxpose.xlu1.b32.cont [6/9] (short) %v484_v10, 128  ;;  %1212 = vxpose.xlu0.b32.cont [6/9] (short) %v483_v11, 128 }
 0x2e0   : > { %1503 = vst.msk [vmem:[%s1942_s18 + $0x738] sm:$0xff] %vm1272_vm0, %v1130_v12  ;;  %1471 = vst.msk [vmem:[%s1942_s18 + $0x638] sm:$0xff] %vm1272_vm0, %v1098_v13 }
 0x2e3   : > { %v1131_v16 = vpop.trf.xlu1  ;;  %v1099_v17 = vpop.trf.xlu0  ;;  %1245 = vxpose.xlu1.b32.cont [7/9] (short) %v490_v14, 128  ;;  %1213 = vxpose.xlu0.b32.cont [7/9] (short) %v489_v15, 128 }
 0x2e4   : > { %1505 = vst.msk [vmem:[%s1942_s18 + $0x748] sm:$0xff] %vm1272_vm0, %v1131_v16  ;;  %1473 = vst.msk [vmem:[%s1942_s18 + $0x648] sm:$0xff] %vm1272_vm0, %v1099_v17 }
 0x2e7   : > { %v1132_v20 = vpop.trf.xlu1  ;;  %v1100_v21 = vpop.trf.xlu0  ;;  %1246 = vxpose.xlu1.b32.cont [8/9] (short) %v496_v18, 128  ;;  %1214 = vxpose.xlu0.b32.cont [8/9] (short) %v495_v19, 128 }
 0x2e8   : > { %1507 = vst.msk [vmem:[%s1942_s18 + $0x758] sm:$0xff] %vm1272_vm0, %v1132_v20  ;;  %1475 = vst.msk [vmem:[%s1942_s18 + $0x658] sm:$0xff] %vm1272_vm0, %v1100_v21 }
 0x2eb   : > { %v1133_v24 = vpop.trf.xlu1  ;;  %v1101_v25 = vpop.trf.xlu0  ;;  %1247 = vxpose.xlu1.b32.end [9/9] (short) %v502_v22, 128  ;;  %1215 = vxpose.xlu0.b32.end [9/9] (short) %v501_v23, 128 }
 0x2ec   : > { %1509 = vst.msk [vmem:[%s1942_s18 + $0x768] sm:$0xff] %vm1272_vm0, %v1133_v24  ;;  %1477 = vst.msk [vmem:[%s1942_s18 + $0x668] sm:$0xff] %vm1272_vm0, %v1101_v25 }
 0x2ef   : > { %v1134_v26 = vpop.trf.xlu1  ;;  %v1102_v27 = vpop.trf.xlu0 }
 0x2f0   : > { %1511 = vst.msk [vmem:[%s1942_s18 + $0x778] sm:$0xff] %vm1272_vm0, %v1134_v26  ;;  %1479 = vst.msk [vmem:[%s1942_s18 + $0x678] sm:$0xff] %vm1272_vm0, %v1102_v27 }
 0x2f3   : > { %v1135_v28 = vpop.trf.xlu1  ;;  %v1103_v29 = vpop.trf.xlu0 }
 0x2f4   : > { %1513 = vst.msk [vmem:[%s1942_s18 + $0x788] sm:$0xff] %vm1272_vm0, %v1135_v28  ;;  %1481 = vst.msk [vmem:[%s1942_s18 + $0x688] sm:$0xff] %vm1272_vm0, %v1103_v29 }
 0x2f7   : > { %v1136_v30 = vpop.trf.xlu1  ;;  %v1104_v31 = vpop.trf.xlu0 }
 0x2f8   : > { %1515 = vst.msk [vmem:[%s1942_s18 + $0x798] sm:$0xff] %vm1272_vm0, %v1136_v30  ;;  %1483 = vst.msk [vmem:[%s1942_s18 + $0x698] sm:$0xff] %vm1272_vm0, %v1104_v31 }
 0x2fb   : > { %v1137_v32 = vpop.trf.xlu1  ;;  %v1105_v33 = vpop.trf.xlu0 }
 0x2fc   : > { %1517 = vst.msk [vmem:[%s1942_s18 + $0x7a8] sm:$0xff] %vm1272_vm0, %v1137_v32  ;;  %1485 = vst.msk [vmem:[%s1942_s18 + $0x6a8] sm:$0xff] %vm1272_vm0, %v1105_v33 }
 0x2ff   : > { %v1138_v34 = vpop.trf.xlu1  ;;  %v1106_v35 = vpop.trf.xlu0 }
 0x300   : > { %1519 = vst.msk [vmem:[%s1942_s18 + $0x7b8] sm:$0xff] %vm1272_vm0, %v1138_v34  ;;  %1487 = vst.msk [vmem:[%s1942_s18 + $0x6b8] sm:$0xff] %vm1272_vm0, %v1106_v35 }
 0x303   : > { %v1139_v36 = vpop.trf.xlu1  ;;  %v1107_v37 = vpop.trf.xlu0 }
 0x304   : > { %1521 = vst.msk [vmem:[%s1942_s18 + $0x7c8] sm:$0xff] %vm1272_vm0, %v1139_v36  ;;  %1489 = vst.msk [vmem:[%s1942_s18 + $0x6c8] sm:$0xff] %vm1272_vm0, %v1107_v37 }
 0x307   : > { %v1140_v38 = vpop.trf.xlu1  ;;  %v1108_v39 = vpop.trf.xlu0 }
 0x308   : > { %1523 = vst.msk [vmem:[%s1942_s18 + $0x7d8] sm:$0xff] %vm1272_vm0, %v1140_v38  ;;  %1491 = vst.msk [vmem:[%s1942_s18 + $0x6d8] sm:$0xff] %vm1272_vm0, %v1108_v39 }
 0x30b   : > { %v1141_v40 = vpop.trf.xlu1  ;;  %v1109_v41 = vpop.trf.xlu0 }
 0x30c   : > { %1525 = vst.msk [vmem:[%s1942_s18 + $0x7e8] sm:$0xff] %vm1272_vm0, %v1141_v40  ;;  %1493 = vst.msk [vmem:[%s1942_s18 + $0x6e8] sm:$0xff] %vm1272_vm0, %v1109_v41 }
 0x30f   : > { %v1142_v42 = vpop.trf.xlu1  ;;  %v1110_v43 = vpop.trf.xlu0 }
 0x310   : > { %1527 = vst.msk [vmem:[%s1942_s18 + $0x7f8] sm:$0xff] %vm1272_vm0, %v1142_v42  ;;  %1495 = vst.msk [vmem:[%s1942_s18 + $0x6f8] sm:$0xff] %vm1272_vm0, %v1110_v43 }
 0x313   : > { %v1191_v44 = vpop.trf.xlu1  ;;  %v1159_v45 = vpop.trf.xlu0 }
 0x314   : > { %1561 = vst.msk [vmem:[%s1942_s18 + $0x908] sm:$0xff] %vm1272_vm0, %v1191_v44  ;;  %1529 = vst.msk [vmem:[%s1942_s18 + $0x808] sm:$0xff] %vm1272_vm0, %v1159_v45 }
 0x317   : > { %v1192_v46 = vpop.trf.xlu1  ;;  %v1160_v47 = vpop.trf.xlu0 }
 0x318   : > { %1563 = vst.msk [vmem:[%s1942_s18 + $0x918] sm:$0xff] %vm1272_vm0, %v1192_v46  ;;  %1531 = vst.msk [vmem:[%s1942_s18 + $0x818] sm:$0xff] %vm1272_vm0, %v1160_v47 }
 0x31b   : > { %v1193_v48 = vpop.trf.xlu1  ;;  %v1161_v49 = vpop.trf.xlu0 }
 0x31c   : > { %1565 = vst.msk [vmem:[%s1942_s18 + $0x928] sm:$0xff] %vm1272_vm0, %v1193_v48  ;;  %1533 = vst.msk [vmem:[%s1942_s18 + $0x828] sm:$0xff] %vm1272_vm0, %v1161_v49 }
 0x31f   : > { %v1194_v50 = vpop.trf.xlu1  ;;  %v1162_v51 = vpop.trf.xlu0 }
 0x320   : > { %1567 = vst.msk [vmem:[%s1942_s18 + $0x938] sm:$0xff] %vm1272_vm0, %v1194_v50  ;;  %1535 = vst.msk [vmem:[%s1942_s18 + $0x838] sm:$0xff] %vm1272_vm0, %v1162_v51 }
 0x323   : > { %v1195_v52 = vpop.trf.xlu1  ;;  %v1163_v53 = vpop.trf.xlu0 }
 0x324   : > { %1569 = vst.msk [vmem:[%s1942_s18 + $0x948] sm:$0xff] %vm1272_vm0, %v1195_v52  ;;  %1537 = vst.msk [vmem:[%s1942_s18 + $0x848] sm:$0xff] %vm1272_vm0, %v1163_v53 }
 0x327   : > { %v1196_v54 = vpop.trf.xlu1  ;;  %v1164_v55 = vpop.trf.xlu0 }
 0x328   : > { %1571 = vst.msk [vmem:[%s1942_s18 + $0x958] sm:$0xff] %vm1272_vm0, %v1196_v54  ;;  %1539 = vst.msk [vmem:[%s1942_s18 + $0x858] sm:$0xff] %vm1272_vm0, %v1164_v55 }
 0x32b   : > { %v1197_v56 = vpop.trf.xlu1  ;;  %v1165_v57 = vpop.trf.xlu0 }
 0x32c   : > { %1573 = vst.msk [vmem:[%s1942_s18 + $0x968] sm:$0xff] %vm1272_vm0, %v1197_v56  ;;  %1541 = vst.msk [vmem:[%s1942_s18 + $0x868] sm:$0xff] %vm1272_vm0, %v1165_v57 }
 0x32f   : > { %v1198_v58 = vpop.trf.xlu1  ;;  %v1166_v59 = vpop.trf.xlu0 }
 0x330   : > { %1575 = vst.msk [vmem:[%s1942_s18 + $0x978] sm:$0xff] %vm1272_vm0, %v1198_v58  ;;  %1543 = vst.msk [vmem:[%s1942_s18 + $0x878] sm:$0xff] %vm1272_vm0, %v1166_v59 }
 0x333   : > { %v1199_v60 = vpop.trf.xlu1  ;;  %v1167_v61 = vpop.trf.xlu0 }
 0x334   : > { %1577 = vst.msk [vmem:[%s1942_s18 + $0x988] sm:$0xff] %vm1272_vm0, %v1199_v60  ;;  %1545 = vst.msk [vmem:[%s1942_s18 + $0x888] sm:$0xff] %vm1272_vm0, %v1167_v61 }
 0x337   : > { %v1200_v62 = vpop.trf.xlu1  ;;  %v1168_v63 = vpop.trf.xlu0 }
 0x338   : > { %1579 = vst.msk [vmem:[%s1942_s18 + $0x998] sm:$0xff] %vm1272_vm0, %v1200_v62  ;;  %1547 = vst.msk [vmem:[%s1942_s18 + $0x898] sm:$0xff] %vm1272_vm0, %v1168_v63 }
 0x33b   : > { %v1201_v0 = vpop.trf.xlu1  ;;  %v1169_v1 = vpop.trf.xlu0 }
 0x33c   : > { %1581 = vst.msk [vmem:[%s1942_s18 + $0x9a8] sm:$0xff] %vm1272_vm0, %v1201_v0  ;;  %1549 = vst.msk [vmem:[%s1942_s18 + $0x8a8] sm:$0xff] %vm1272_vm0, %v1169_v1 }
 0x33f   : > { %v1202_v2 = vpop.trf.xlu1  ;;  %v1170_v3 = vpop.trf.xlu0 }
 0x340   : > { %1583 = vst.msk [vmem:[%s1942_s18 + $0x9b8] sm:$0xff] %vm1272_vm0, %v1202_v2  ;;  %1551 = vst.msk [vmem:[%s1942_s18 + $0x8b8] sm:$0xff] %vm1272_vm0, %v1170_v3 }
 0x343   : > { %v1203_v4 = vpop.trf.xlu1  ;;  %v1171_v5 = vpop.trf.xlu0 }
 0x344   : > { %1585 = vst.msk [vmem:[%s1942_s18 + $0x9c8] sm:$0xff] %vm1272_vm0, %v1203_v4  ;;  %1553 = vst.msk [vmem:[%s1942_s18 + $0x8c8] sm:$0xff] %vm1272_vm0, %v1171_v5 }
 0x347   : > { %v1204_v6 = vpop.trf.xlu1  ;;  %v1172_v7 = vpop.trf.xlu0 }
 0x348   : > { %1587 = vst.msk [vmem:[%s1942_s18 + $0x9d8] sm:$0xff] %vm1272_vm0, %v1204_v6  ;;  %1555 = vst.msk [vmem:[%s1942_s18 + $0x8d8] sm:$0xff] %vm1272_vm0, %v1172_v7 }
 0x34b   : > { %v1205_v8 = vpop.trf.xlu1  ;;  %v1173_v9 = vpop.trf.xlu0 }
 0x34c   : > { %1589 = vst.msk [vmem:[%s1942_s18 + $0x9e8] sm:$0xff] %vm1272_vm0, %v1205_v8  ;;  %1557 = vst.msk [vmem:[%s1942_s18 + $0x8e8] sm:$0xff] %vm1272_vm0, %v1173_v9 }
 0x34f   : > { %v1206_v10 = vpop.trf.xlu1  ;;  %v1174_v11 = vpop.trf.xlu0 }
 0x350   : > { %1591 = vst.msk [vmem:[%s1942_s18 + $0x9f8] sm:$0xff] %vm1272_vm0, %v1206_v10  ;;  %1559 = vst.msk [vmem:[%s1942_s18 + $0x8f8] sm:$0xff] %vm1272_vm0, %v1174_v11 }
 0x353   : > { %v1255_v12 = vpop.trf.xlu1  ;;  %v1223_v13 = vpop.trf.xlu0 }
 0x354   : > { %1625 = vst.msk [vmem:[%s1942_s18 + $0xb08] sm:$0xff] %vm1272_vm0, %v1255_v12  ;;  %1593 = vst.msk [vmem:[%s1942_s18 + $0xa08] sm:$0xff] %vm1272_vm0, %v1223_v13 }
 0x357   : > { %v1256_v14 = vpop.trf.xlu1  ;;  %v1224_v15 = vpop.trf.xlu0 }
 0x358   : > { %1627 = vst.msk [vmem:[%s1942_s18 + $0xb18] sm:$0xff] %vm1272_vm0, %v1256_v14  ;;  %1595 = vst.msk [vmem:[%s1942_s18 + $0xa18] sm:$0xff] %vm1272_vm0, %v1224_v15 }
 0x35b   : > { %v1257_v16 = vpop.trf.xlu1  ;;  %v1225_v17 = vpop.trf.xlu0 }
 0x35c   : > { %1629 = vst.msk [vmem:[%s1942_s18 + $0xb28] sm:$0xff] %vm1272_vm0, %v1257_v16  ;;  %1597 = vst.msk [vmem:[%s1942_s18 + $0xa28] sm:$0xff] %vm1272_vm0, %v1225_v17 }
 0x35f   : > { %v1258_v18 = vpop.trf.xlu1  ;;  %v1226_v19 = vpop.trf.xlu0 }
 0x360   : > { %1631 = vst.msk [vmem:[%s1942_s18 + $0xb38] sm:$0xff] %vm1272_vm0, %v1258_v18  ;;  %1599 = vst.msk [vmem:[%s1942_s18 + $0xa38] sm:$0xff] %vm1272_vm0, %v1226_v19 }
 0x363   : > { %v1259_v20 = vpop.trf.xlu1  ;;  %v1227_v21 = vpop.trf.xlu0 }
 0x364   : > { %1633 = vst.msk [vmem:[%s1942_s18 + $0xb48] sm:$0xff] %vm1272_vm0, %v1259_v20  ;;  %1601 = vst.msk [vmem:[%s1942_s18 + $0xa48] sm:$0xff] %vm1272_vm0, %v1227_v21 }
 0x367   : > { %v1260_v22 = vpop.trf.xlu1  ;;  %v1228_v23 = vpop.trf.xlu0 }
 0x368   : > { %1635 = vst.msk [vmem:[%s1942_s18 + $0xb58] sm:$0xff] %vm1272_vm0, %v1260_v22  ;;  %1603 = vst.msk [vmem:[%s1942_s18 + $0xa58] sm:$0xff] %vm1272_vm0, %v1228_v23 }
 0x36b   : > { %v1261_v24 = vpop.trf.xlu1  ;;  %v1229_v25 = vpop.trf.xlu0 }
 0x36c   : > { %1637 = vst.msk [vmem:[%s1942_s18 + $0xb68] sm:$0xff] %vm1272_vm0, %v1261_v24  ;;  %1605 = vst.msk [vmem:[%s1942_s18 + $0xa68] sm:$0xff] %vm1272_vm0, %v1229_v25 }
 0x36f   : > { %v1262_v26 = vpop.trf.xlu1  ;;  %v1230_v27 = vpop.trf.xlu0 }
 0x370   : > { %1639 = vst.msk [vmem:[%s1942_s18 + $0xb78] sm:$0xff] %vm1272_vm0, %v1262_v26  ;;  %1607 = vst.msk [vmem:[%s1942_s18 + $0xa78] sm:$0xff] %vm1272_vm0, %v1230_v27 }
 0x373   : > { %v1263_v28 = vpop.trf.xlu1  ;;  %v1231_v29 = vpop.trf.xlu0 }
 0x374   : > { %1641 = vst.msk [vmem:[%s1942_s18 + $0xb88] sm:$0xff] %vm1272_vm0, %v1263_v28  ;;  %1609 = vst.msk [vmem:[%s1942_s18 + $0xa88] sm:$0xff] %vm1272_vm0, %v1231_v29 }
 0x377   : > { %v1264_v30 = vpop.trf.xlu1  ;;  %v1232_v31 = vpop.trf.xlu0 }
 0x378   : > { %1643 = vst.msk [vmem:[%s1942_s18 + $0xb98] sm:$0xff] %vm1272_vm0, %v1264_v30  ;;  %1611 = vst.msk [vmem:[%s1942_s18 + $0xa98] sm:$0xff] %vm1272_vm0, %v1232_v31 }
 0x37b   : > { %v1265_v32 = vpop.trf.xlu1  ;;  %v1233_v33 = vpop.trf.xlu0 }
 0x37c   : > { %1645 = vst.msk [vmem:[%s1942_s18 + $0xba8] sm:$0xff] %vm1272_vm0, %v1265_v32  ;;  %1613 = vst.msk [vmem:[%s1942_s18 + $0xaa8] sm:$0xff] %vm1272_vm0, %v1233_v33 }
 0x37f   : > { %v1266_v34 = vpop.trf.xlu1  ;;  %v1234_v35 = vpop.trf.xlu0 }
 0x380   : > { %1647 = vst.msk [vmem:[%s1942_s18 + $0xbb8] sm:$0xff] %vm1272_vm0, %v1266_v34  ;;  %1615 = vst.msk [vmem:[%s1942_s18 + $0xab8] sm:$0xff] %vm1272_vm0, %v1234_v35 }
 0x383   : > { %v1267_v36 = vpop.trf.xlu1  ;;  %v1235_v37 = vpop.trf.xlu0 }
 0x384   : > { %1649 = vst.msk [vmem:[%s1942_s18 + $0xbc8] sm:$0xff] %vm1272_vm0, %v1267_v36  ;;  %1617 = vst.msk [vmem:[%s1942_s18 + $0xac8] sm:$0xff] %vm1272_vm0, %v1235_v37 }
 0x387   : > { %v1268_v38 = vpop.trf.xlu1  ;;  %v1236_v39 = vpop.trf.xlu0 }
 0x388   : > { %1651 = vst.msk [vmem:[%s1942_s18 + $0xbd8] sm:$0xff] %vm1272_vm0, %v1268_v38  ;;  %1619 = vst.msk [vmem:[%s1942_s18 + $0xad8] sm:$0xff] %vm1272_vm0, %v1236_v39 }
 0x38b   : > { %v1269_v40 = vpop.trf.xlu1  ;;  %v1237_v41 = vpop.trf.xlu0 }
 0x38c   : > { %1653 = vst.msk [vmem:[%s1942_s18 + $0xbe8] sm:$0xff] %vm1272_vm0, %v1269_v40  ;;  %1621 = vst.msk [vmem:[%s1942_s18 + $0xae8] sm:$0xff] %vm1272_vm0, %v1237_v41 }
 0x38f   : > { %v1270_v42 = vpop.trf.xlu1  ;;  %v1238_v43 = vpop.trf.xlu0 }
 0x390   : > { %1655 = vst.msk [vmem:[%s1942_s18 + $0xbf8] sm:$0xff] %vm1272_vm0, %v1270_v42  ;;  %1623 = vst.msk [vmem:[%s1942_s18 + $0xaf8] sm:$0xff] %vm1272_vm0, %v1238_v43 }
 0x391 PF: > { %s11_s8 = sadd.s32 1, %s1834_s8   ;;  %s2765_s6 = smov %s1830_s7 }
 0x392   : > { %p8_p5 = scmp.ge.s32.totalorder %s11_s8, 6   ;;  %s2766_s7 = smov %s2768_s9 }
 0x394   :  { %10 = sbr.rel (!%p8_p5) target bundleno = 2 (0x2), region = 54 }

</bundles_post_ra>
